<compile_context>
chip_gen: v6e
topology: v6e:2x2x1
jax: 0.10.0
libtpu: 0.0.40
codegen_flags: <defaults>
</compile_context>

<pallas_src>
import jax
import jax.numpy as jnp
from jax.experimental import pallas as pl
from jax.experimental.pallas import tpu as pltpu

# ---------------- "args" hyperparameters (small, self-consistent) ------------
HIDDEN_DIM = 32
H = HIDDEN_DIM
H3 = HIDDEN_DIM // 3          # 10  (hidden_dim // 3, truncated like PyTorch)
D_CAT = 4 * H3                # 40
N_HEADS = 2
HEAD_DIM = H // N_HEADS       # 16
N_LAYERS = 2                  # LSTM layers
MAX_SEQ_LEN = 8
N_TEST = 5
N_QUESTIONS = 9
N_TAG = 6
BATCH = 2
SEQ = 8
LN_EPS = 1e-5

EMB_ROWS = 3 + (N_TEST + 1) + (N_QUESTIONS + 1) + (N_TAG + 1)   # 26 rows total
EMB_PAD = 32                  # padded one-hot width / folded table rows

# ---- narrow weight slab (NW_ROWS, 64): matrices at lane offset 0 ------------
R_EMBC = 0          # (32, 32)  blockdiag(emb tables) @ comb_w   (rows 26:32 zero)
R_WQ = 32           # (32, 32)  query Linear ∘ in_proj_q * scale (folded)
R_WKV = 64          # (32, 64)  [key|value] Linear ∘ in_proj_{k,v} (folded)
R_AO = 96           # (32, 32)  attention out_proj
R_F1 = 128          # (32, 32)  FFN layer1
R_F2 = 160          # (32, 32)  FFN layer2
R_VEC = 192         # 12 bias / LN / fc row vectors
(V_COMB_B, V_QB, V_KVB, V_AOB, V_LN1W, V_LN1B, V_F1B, V_F2B,
 V_LN2W, V_LN2B, V_FCW, V_FCB) = range(12)
NVEC = 12
NW_ROWS = 208

# ---- wide weight slab (WW_ROWS, 256): fused / hoisted LSTM weights ----------
R_WIH = 0            # (32, 256) = [Wih1 | 0]           (hoisted x-gates, both layers)
R_WFUS = 32          # (64, 256) = [[Whh1, Wih2],[0, Whh2]]  (fused per-step recurrence)
R_BEXT = 96          # (1, 256)  = [bih1+bhh1 | bih2+bhh2]
WW_ROWS = 104


def _layernorm(x, w, b):
    mu = jnp.mean(x, axis=-1, keepdims=True)
    var = jnp.mean(jnp.square(x - mu), axis=-1, keepdims=True)
    return (x - mu) * jax.lax.rsqrt(var + LN_EPS) * w + b


# =========================== Fused forward kernel ============================
def fused_kernel(idx_ref, wn_ref, ww_ref, out_ref):
    """Whole LastQuery forward, single grid=() invocation.

    idx_ref : (B*S, 4) int32, batch-major rows (b*S+s); the 4 fields already
              carry the row offsets into the 26-row folded embedding table.
    wn_ref  : (NW_ROWS, 64)  f32 narrow weight slab (see row map above).
    ww_ref  : (WW_ROWS, 256) f32 wide LSTM weight slab.
    out_ref : (B, S) f32 sigmoid predictions.
    """
    f32 = jnp.float32
    dot = lambda a, b: jnp.dot(a, b, preferred_element_type=f32)
    BS = BATCH * SEQ
    hd = HEAD_DIM
    G = 4 * H

    vecs = wn_ref[R_VEC:R_VEC + NVEC, :]                         # (12, 64)
    vrow = lambda i, w=H: vecs[i:i + 1, 0:w]

    # ---- embedding gather + concat + comb_proj as ONE one-hot matmul --------
    idx = idx_ref[...]                                           # (16, 4) int32
    iota = jax.lax.broadcasted_iota(jnp.int32, (BS, EMB_PAD), 1)
    onehot = jnp.where(iota == idx[:, 0:1], 1.0, 0.0)
    for f in range(1, 4):
        onehot = onehot + jnp.where(iota == idx[:, f:f + 1], 1.0, 0.0)
    embed = dot(onehot, wn_ref[R_EMBC:R_EMBC + EMB_PAD, 0:H]) + vrow(V_COMB_B)  # (16, H)

    # ---- last-query multi-head attention (q only for the last positions) ----
    kv = dot(embed, wn_ref[R_WKV:R_WKV + H, 0:2 * H]) + vrow(V_KVB, 2 * H)      # (16, 2H)
    q_in = jnp.concatenate(
        [embed[(b + 1) * SEQ - 1:(b + 1) * SEQ, :] for b in range(BATCH)], axis=0)  # (B, H)
    q = dot(q_in, wn_ref[R_WQ:R_WQ + H, 0:H]) + vrow(V_QB)       # (B, H), scale folded in

    kv3 = kv.reshape(BATCH, SEQ, 2 * H)                          # batch-major, free reshape
    k3 = kv3[:, :, 0:H]                                          # (B, S, H)
    v3 = kv3[:, :, H:2 * H]                                      # (B, S, H)

    sc = []
    for h in range(N_HEADS):                                     # 2 static iterations
        qh = q[:, h * hd:(h + 1) * hd].reshape(BATCH, 1, hd)
        kh = k3[:, :, h * hd:(h + 1) * hd]
        sc.append(jax.lax.dot_general(qh, kh, (((2,), (2,)), ((0,), (0,))),
                                      preferred_element_type=f32))  # (B, 1, S)
    sc = jnp.concatenate(sc, axis=1)                             # (B, NH, S)
    sc = sc - jnp.max(sc, axis=-1, keepdims=True)                # one stacked softmax
    p = jnp.exp(sc)
    p = p * pl.reciprocal(jnp.sum(p, axis=-1, keepdims=True), approx=True)
    ctx = []
    for h in range(N_HEADS):
        vh = v3[:, :, h * hd:(h + 1) * hd]
        ctx.append(jax.lax.dot_general(p[:, h:h + 1, :], vh, (((2,), (1,)), ((0,), (0,))),
                                       preferred_element_type=f32))  # (B, 1, hd)
    attn = jnp.concatenate(ctx, axis=-1).reshape(BATCH, H)       # (B, H)
    attn = dot(attn, wn_ref[R_AO:R_AO + H, 0:H]) + vrow(V_AOB)   # out_proj

    # residual: broadcast each batch's single attended query over its sequence
    attn_rep = jnp.broadcast_to(attn[:, None, :], (BATCH, SEQ, H)).reshape(BS, H)

    out1 = _layernorm(embed + attn_rep, vrow(V_LN1W), vrow(V_LN1B))
    ff = dot(jnp.maximum(dot(out1, wn_ref[R_F1:R_F1 + H, 0:H]) + vrow(V_F1B), 0.0),
             wn_ref[R_F2:R_F2 + H, 0:H]) + vrow(V_F2B)
    out2 = _layernorm(embed + ff, vrow(V_LN2W), vrow(V_LN2B))    # (16, H), batch-major

    # ---- 2-layer LSTM, software-pipelined, fused recurrent matmul ----------
    # Re-layout once to time-major (row = t*B + b) so the hoisted x-gates are
    # read with contiguous 2-row slices inside the serial recurrence.
    out2_tm = jnp.swapaxes(out2.reshape(BATCH, SEQ, H), 0, 1).reshape(BS, H)
    bias_ext = ww_ref[R_BEXT:R_BEXT + 1, :]                      # (1, 8H) = [b1 | b2]
    gx = dot(out2_tm, ww_ref[R_WIH:R_WIH + H, :]) + bias_ext     # (16, 8H): [x-gates L1 | b2]
    w_fused = ww_ref[R_WFUS:R_WFUS + 2 * H, :]                   # (2H, 8H)
    fc_w = vrow(V_FCW)                                           # (1, H)
    fc_b = vecs[V_FCB:V_FCB + 1, 0:1]                            # (1, 1)

    h1 = jnp.zeros((BATCH, H), f32); c1 = jnp.zeros((BATCH, H), f32)
    h2 = jnp.zeros((BATCH, H), f32); c2 = jnp.zeros((BATCH, H), f32)
    # Combined step t runs layer-1 time step t and layer-2 time step t-1.
    for t in range(SEQ + 1):
        if t == 0:
            pre = gx[0:BATCH, :]                                 # h1,h2 are zero -> rec == 0
        else:
            rec = dot(jnp.concatenate([h1, h2], axis=-1), w_fused)          # (B, 8H)
            pre = rec + (gx[t * BATCH:(t + 1) * BATCH, :] if t < SEQ else bias_ext)
        sig = jax.nn.sigmoid(pre)                                # one EUP pass for both layers
        th = jnp.tanh(pre)
        if t < SEQ:            # layer-1 cell, time t   (gate order i|f|g|o)
            c1 = sig[:, H:2 * H] * c1 + sig[:, 0:H] * th[:, 2 * H:3 * H]
            h1 = sig[:, 3 * H:4 * H] * jnp.tanh(c1)
        if t > 0:              # layer-2 cell, time t-1  -> prediction column t-1
            c2 = sig[:, G + H:G + 2 * H] * c2 + sig[:, G:G + H] * th[:, G + 2 * H:G + 3 * H]
            h2 = sig[:, G + 3 * H:G + 4 * H] * jnp.tanh(c2)
            logit = jnp.sum(h2 * fc_w, axis=-1, keepdims=True) + fc_b       # (B, 1)
            out_ref[:, t - 1:t] = jax.nn.sigmoid(logit)          # lane-dense column store


def fused_forward(idx, wn, ww):
    vspec = pl.BlockSpec(memory_space=pltpu.MemorySpace.VMEM)
    return pl.pallas_call(
        fused_kernel,
        out_shape=jax.ShapeDtypeStruct((BATCH, SEQ), jnp.float32),
        in_specs=[vspec, vspec, vspec],
        out_specs=vspec,
    )(idx, wn, ww)


# =============================== Glue / wrapper ==============================
def last_query_forward(pp, test, question, tag, mask, interaction, index):
    del mask, index  # unused in the PyTorch forward as well
    off_t = 3
    off_q = off_t + (N_TEST + 1)
    off_g = off_q + (N_QUESTIONS + 1)
    idx = jnp.stack([interaction, test + off_t, question + off_q, tag + off_g],
                    axis=-1).astype(jnp.int32).reshape(BATCH * SEQ, 4)
    return fused_forward(idx, pp["wn"], pp["ww"])                # (B, S)


# ============================ Parameter handling =============================
def init_params(key):
    """Raw parameters mirroring the PyTorch module's parameter set."""
    keys = iter(jax.random.split(key, 64))

    def rnd(shape, scale=0.1):
        return jax.random.normal(next(keys), shape, jnp.float32) * scale

    p = {}
    p["emb_interaction"] = rnd((3, H3))
    p["emb_test"] = rnd((N_TEST + 1, H3))
    p["emb_question"] = rnd((N_QUESTIONS + 1, H3))
    p["emb_tag"] = rnd((N_TAG + 1, H3))
    p["emb_position"] = rnd((MAX_SEQ_LEN, H))          # defined in __init__, unused in forward
    p["comb_w_t"] = rnd((D_CAT, H)); p["comb_b"] = rnd((1, H))
    for name in ("q", "k", "v"):                       # query/key/value Linears
        p[f"{name}_w_t"] = rnd((H, H)); p[f"{name}_b"] = rnd((1, H))
    for name in ("aq", "ak", "av", "ao"):              # MHA in_proj (q/k/v) + out_proj
        p[f"{name}_w_t"] = rnd((H, H)); p[f"{name}_b"] = rnd((1, H))
    p["ln1_w"] = jnp.ones((1, H), jnp.float32); p["ln1_b"] = jnp.zeros((1, H), jnp.float32)
    p["ln2_w"] = jnp.ones((1, H), jnp.float32); p["ln2_b"] = jnp.zeros((1, H), jnp.float32)
    p["f1_w_t"] = rnd((H, H)); p["f1_b"] = rnd((1, H))
    p["f2_w_t"] = rnd((H, H)); p["f2_b"] = rnd((1, H))
    p["lstm_wih_t"] = rnd((N_LAYERS, H, 4 * H))        # pre-transposed, gate order i|f|g|o
    p["lstm_whh_t"] = rnd((N_LAYERS, H, 4 * H))
    p["lstm_bih"] = rnd((N_LAYERS, 1, 4 * H))
    p["lstm_bhh"] = rnd((N_LAYERS, 1, 4 * H))
    p["fc_w"] = rnd((1, H)); p["fc_b"] = rnd((1, 1))
    return p


def pack_params(p):
    """One-time exact algebraic folds + packing into the kernel's two slabs."""
    f32 = jnp.float32
    scale = 1.0 / (HEAD_DIM ** 0.5)

    # embedding ⊗ comb_proj fold: 26-row table = blockdiag(emb tables) @ comb_w
    tables = [p["emb_interaction"], p["emb_test"], p["emb_question"], p["emb_tag"]]
    blocks = [tbl @ p["comb_w_t"][i * H3:(i + 1) * H3, :] for i, tbl in enumerate(tables)]
    w_embcomb = jnp.pad(jnp.concatenate(blocks, axis=0), ((0, EMB_PAD - EMB_ROWS), (0, 0)))

    # q/k/v Linear ⊗ MHA in_proj folds (1/sqrt(head_dim) folded into the q path)
    aqw = p["aq_w_t"] * scale; aqb = p["aq_b"] * scale
    wq = p["q_w_t"] @ aqw;           bq = p["q_b"] @ aqw + aqb
    wk = p["k_w_t"] @ p["ak_w_t"];   bk = p["k_b"] @ p["ak_w_t"] + p["ak_b"]
    wv = p["v_w_t"] @ p["av_w_t"];   bv = p["v_b"] @ p["av_w_t"] + p["av_b"]
    wkv = jnp.concatenate([wk, wv], axis=1); bkv = jnp.concatenate([bk, bv], axis=1)

    def place(slab, r, c, mat):
        return slab.at[r:r + mat.shape[0], c:c + mat.shape[1]].set(mat)

    wn = jnp.zeros((NW_ROWS, 64), f32)
    wn = place(wn, R_EMBC, 0, w_embcomb)
    wn = place(wn, R_WQ, 0, wq)
    wn = place(wn, R_WKV, 0, wkv)
    wn = place(wn, R_AO, 0, p["ao_w_t"])
    wn = place(wn, R_F1, 0, p["f1_w_t"])
    wn = place(wn, R_F2, 0, p["f2_w_t"])
    for vi, row in [(V_COMB_B, p["comb_b"]), (V_QB, bq), (V_KVB, bkv), (V_AOB, p["ao_b"]),
                    (V_LN1W, p["ln1_w"]), (V_LN1B, p["ln1_b"]), (V_F1B, p["f1_b"]),
                    (V_F2B, p["f2_b"]), (V_LN2W, p["ln2_w"]), (V_LN2B, p["ln2_b"]),
                    (V_FCW, p["fc_w"]), (V_FCB, p["fc_b"])]:
        wn = place(wn, R_VEC + vi, 0, row)

    # fused / hoisted LSTM weights
    wih1, wih2 = p["lstm_wih_t"][0], p["lstm_wih_t"][1]
    whh1, whh2 = p["lstm_whh_t"][0], p["lstm_whh_t"][1]
    b1 = p["lstm_bih"][0] + p["lstm_bhh"][0]
    b2 = p["lstm_bih"][1] + p["lstm_bhh"][1]
    ww = jnp.zeros((WW_ROWS, 256), f32)
    ww = place(ww, R_WIH, 0, wih1)                      # [Wih1 | 0]
    ww = place(ww, R_WFUS, 0, whh1)                     # [[Whh1, Wih2],
    ww = place(ww, R_WFUS, 4 * H, wih2)                 #  [  0 , Whh2]]
    ww = place(ww, R_WFUS + H, 4 * H, whh2)
    ww = place(ww, R_BEXT, 0, jnp.concatenate([b1, b2], axis=1))

    return {"wn": wn, "ww": ww}


# ======================= Pure-JAX reference (unfolded) =======================
def reference_forward(p, test, question, tag, interaction):
    scale = 1.0 / (HEAD_DIM ** 0.5)
    e = jnp.concatenate([p["emb_interaction"][interaction], p["emb_test"][test],
                         p["emb_question"][question], p["emb_tag"][tag]], axis=-1)
    embed = e @ p["comb_w_t"] + p["comb_b"][0]                         # (B, S, H)
    q1 = embed[:, -1:, :] @ p["q_w_t"] + p["q_b"][0]
    k1 = embed @ p["k_w_t"] + p["k_b"][0]
    v1 = embed @ p["v_w_t"] + p["v_b"][0]
    q2 = (q1 @ p["aq_w_t"] + p["aq_b"][0]) * scale
    k2 = k1 @ p["ak_w_t"] + p["ak_b"][0]
    v2 = v1 @ p["av_w_t"] + p["av_b"][0]
    heads = []
    for h in range(N_HEADS):
        sl = slice(h * HEAD_DIM, (h + 1) * HEAD_DIM)
        s = jnp.einsum('bqd,bkd->bqk', q2[:, :, sl], k2[:, :, sl])
        heads.append(jnp.einsum('bqk,bkd->bqd', jax.nn.softmax(s, axis=-1), v2[:, :, sl]))
    att = jnp.concatenate(heads, axis=-1) @ p["ao_w_t"] + p["ao_b"][0]

    def ln(x, w, b):
        mu = x.mean(-1, keepdims=True)
        var = ((x - mu) ** 2).mean(-1, keepdims=True)
        return (x - mu) / jnp.sqrt(var + LN_EPS) * w + b

    out1 = ln(embed + att, p["ln1_w"][0], p["ln1_b"][0])
    ffn = jnp.maximum(out1 @ p["f1_w_t"] + p["f1_b"][0], 0.0) @ p["f2_w_t"] + p["f2_b"][0]
    x = ln(embed + ffn, p["ln2_w"][0], p["ln2_b"][0])
    for layer in range(N_LAYERS):
        wih, whh = p["lstm_wih_t"][layer], p["lstm_whh_t"][layer]
        b = p["lstm_bih"][layer][0] + p["lstm_bhh"][layer][0]
        h = jnp.zeros((BATCH, H)); c = jnp.zeros((BATCH, H)); ys = []
        for t in range(SEQ):
            g = x[:, t, :] @ wih + h @ whh + b
            i = jax.nn.sigmoid(g[:, :H]); f = jax.nn.sigmoid(g[:, H:2 * H])
            gg = jnp.tanh(g[:, 2 * H:3 * H]); o = jax.nn.sigmoid(g[:, 3 * H:])
            c = f * c + i * gg
            h = o * jnp.tanh(c)
            ys.append(h)
        x = jnp.stack(ys, axis=1)
    logits = jnp.einsum('bsh,h->bs', x, p["fc_w"][0]) + p["fc_b"][0, 0]
    return jax.nn.sigmoid(logits)


if __name__ == "__main__":
    root = jax.random.PRNGKey(0)
    k_par, k_in = jax.random.split(root)
    raw = init_params(k_par)
    params = pack_params(raw)

    k1, k2, k3, k4 = jax.random.split(k_in, 4)
    interaction = jax.random.randint(k1, (BATCH, SEQ), 0, 3, dtype=jnp.int32)
    test = jax.random.randint(k2, (BATCH, SEQ), 0, N_TEST + 1, dtype=jnp.int32)
    question = jax.random.randint(k3, (BATCH, SEQ), 0, N_QUESTIONS + 1, dtype=jnp.int32)
    tag = jax.random.randint(k4, (BATCH, SEQ), 0, N_TAG + 1, dtype=jnp.int32)
    mask = jnp.ones((BATCH, SEQ), jnp.int32)            # unused in forward (as in torch)
    index = jnp.arange(BATCH, dtype=jnp.int32)          # unused in forward (as in torch)

    preds = jax.jit(last_query_forward)(params, test, question, tag, mask,
                                        interaction, index)
    preds = jax.block_until_ready(preds)
    assert preds.shape == (BATCH, SEQ)
    assert bool(jnp.all(jnp.isfinite(preds)))
    assert bool(jnp.all((preds >= 0.0) & (preds <= 1.0)))  # sigmoid output

    # correctness vs. an unfolded pure-JAX reference (tolerance covers the
    # pack-time f32 re-association and pl.reciprocal(approx=True))
    ref = jax.jit(reference_forward)(raw, test, question, tag, interaction)
    ref = jax.block_until_ready(ref)
    assert bool(jnp.allclose(preds, ref, atol=5e-3, rtol=0.0)), (
        float(jnp.max(jnp.abs(preds - ref))))
    print("KERNEL_OK")
</pallas_src>

<mosaic_0001>
module attributes {stable_mosaic.version = 11 : i64} {
  func.func @fused_kernel(%arg0: memref<16x4xi32, #tpu.memory_space<vmem>>, %arg1: memref<208x64xf32, #tpu.memory_space<vmem>>, %arg2: memref<104x256xf32, #tpu.memory_space<vmem>>, %arg3: memref<2x8xf32, #tpu.memory_space<vmem>>) attributes {dimension_semantics = [], scalar_prefetch = 0 : i64, scratch_operands = 0 : i64, tpu.core_type = #tpu.core_type<tc>} {
    %c192 = arith.constant 192 : index
    %c0 = arith.constant 0 : index
    %0 = vector.load %arg1[%c192, %c0] : memref<208x64xf32, #tpu.memory_space<vmem>>, vector<12x64xf32>
    %c0_0 = arith.constant 0 : index
    %c0_1 = arith.constant 0 : index
    %1 = vector.load %arg0[%c0_0, %c0_1] : memref<16x4xi32, #tpu.memory_space<vmem>>, vector<16x4xi32>
    %2 = tpu.iota {dimensions = array<i32: 1>} : vector<16x32xi32>
    %3 = vector.extract_strided_slice %1 {offsets = [0, 0], sizes = [16, 1], strides = [1, 1]} : vector<16x4xi32> to vector<16x1xi32>
    %4 = vector.broadcast %3 : vector<16x1xi32> to vector<16x32xi32>
    %5 = arith.cmpi eq, %2, %4 : vector<16x32xi32>
    %cst = arith.constant 1.000000e+00 : f32
    %cst_2 = arith.constant 0.000000e+00 : f32
    %6 = vector.broadcast %cst : f32 to vector<16x32xf32>
    %7 = vector.broadcast %cst_2 : f32 to vector<16x32xf32>
    %8 = arith.select %5, %6, %7 : vector<16x32xi1>, vector<16x32xf32>
    %9 = vector.extract_strided_slice %1 {offsets = [0, 1], sizes = [16, 1], strides = [1, 1]} : vector<16x4xi32> to vector<16x1xi32>
    %10 = vector.broadcast %9 : vector<16x1xi32> to vector<16x32xi32>
    %11 = arith.cmpi eq, %2, %10 : vector<16x32xi32>
    %cst_3 = arith.constant 1.000000e+00 : f32
    %cst_4 = arith.constant 0.000000e+00 : f32
    %12 = vector.broadcast %cst_3 : f32 to vector<16x32xf32>
    %13 = vector.broadcast %cst_4 : f32 to vector<16x32xf32>
    %14 = arith.select %11, %12, %13 : vector<16x32xi1>, vector<16x32xf32>
    %15 = arith.addf %8, %14 : vector<16x32xf32>
    %16 = vector.extract_strided_slice %1 {offsets = [0, 2], sizes = [16, 1], strides = [1, 1]} : vector<16x4xi32> to vector<16x1xi32>
    %17 = vector.broadcast %16 : vector<16x1xi32> to vector<16x32xi32>
    %18 = arith.cmpi eq, %2, %17 : vector<16x32xi32>
    %cst_5 = arith.constant 1.000000e+00 : f32
    %cst_6 = arith.constant 0.000000e+00 : f32
    %19 = vector.broadcast %cst_5 : f32 to vector<16x32xf32>
    %20 = vector.broadcast %cst_6 : f32 to vector<16x32xf32>
    %21 = arith.select %18, %19, %20 : vector<16x32xi1>, vector<16x32xf32>
    %22 = arith.addf %15, %21 : vector<16x32xf32>
    %23 = vector.extract_strided_slice %1 {offsets = [0, 3], sizes = [16, 1], strides = [1, 1]} : vector<16x4xi32> to vector<16x1xi32>
    %24 = vector.broadcast %23 : vector<16x1xi32> to vector<16x32xi32>
    %25 = arith.cmpi eq, %2, %24 : vector<16x32xi32>
    %cst_7 = arith.constant 1.000000e+00 : f32
    %cst_8 = arith.constant 0.000000e+00 : f32
    %26 = vector.broadcast %cst_7 : f32 to vector<16x32xf32>
    %27 = vector.broadcast %cst_8 : f32 to vector<16x32xf32>
    %28 = arith.select %25, %26, %27 : vector<16x32xi1>, vector<16x32xf32>
    %29 = arith.addf %22, %28 : vector<16x32xf32>
    %c0_9 = arith.constant 0 : index
    %c0_10 = arith.constant 0 : index
    %30 = vector.load %arg1[%c0_9, %c0_10] : memref<208x64xf32, #tpu.memory_space<vmem>>, vector<32x32xf32>
    %cst_11 = arith.constant dense<0.000000e+00> : vector<16x32xf32>
    %31 = tpu.matmul %29, %30, %cst_11 {dimension_numbers = #tpu.dot_dimension_numbers<[1], [0], [0], [1], [0, 0, 1, 1], [], []>} : vector<16x32xf32>, vector<32x32xf32>, vector<16x32xf32> -> vector<16x32xf32>
    %32 = vector.extract_strided_slice %0 {offsets = [0, 0], sizes = [1, 32], strides = [1, 1]} : vector<12x64xf32> to vector<1x32xf32>
    %33 = vector.broadcast %32 : vector<1x32xf32> to vector<16x32xf32>
    %34 = arith.addf %31, %33 : vector<16x32xf32>
    %c64 = arith.constant 64 : index
    %c0_12 = arith.constant 0 : index
    %35 = vector.load %arg1[%c64, %c0_12] : memref<208x64xf32, #tpu.memory_space<vmem>>, vector<32x64xf32>
    %cst_13 = arith.constant dense<0.000000e+00> : vector<16x64xf32>
    %36 = tpu.matmul %34, %35, %cst_13 {dimension_numbers = #tpu.dot_dimension_numbers<[1], [0], [0], [1], [0, 0, 1, 1], [], []>} : vector<16x32xf32>, vector<32x64xf32>, vector<16x64xf32> -> vector<16x64xf32>
    %37 = vector.extract_strided_slice %0 {offsets = [2, 0], sizes = [1, 64], strides = [1, 1]} : vector<12x64xf32> to vector<1x64xf32>
    %38 = vector.broadcast %37 : vector<1x64xf32> to vector<16x64xf32>
    %39 = arith.addf %36, %38 : vector<16x64xf32>
    %40 = vector.extract_strided_slice %34 {offsets = [7, 0], sizes = [1, 32], strides = [1, 1]} : vector<16x32xf32> to vector<1x32xf32>
    %41 = vector.extract_strided_slice %34 {offsets = [15, 0], sizes = [1, 32], strides = [1, 1]} : vector<16x32xf32> to vector<1x32xf32>
    %42 = tpu.concatenate %40, %41 in 0 : vector<1x32xf32>, vector<1x32xf32> -> vector<2x32xf32>
    %c32 = arith.constant 32 : index
    %c0_14 = arith.constant 0 : index
    %43 = vector.load %arg1[%c32, %c0_14] : memref<208x64xf32, #tpu.memory_space<vmem>>, vector<32x32xf32>
    %cst_15 = arith.constant dense<0.000000e+00> : vector<2x32xf32>
    %44 = tpu.matmul %42, %43, %cst_15 {dimension_numbers = #tpu.dot_dimension_numbers<[1], [0], [0], [1], [0, 0, 1, 1], [], []>} : vector<2x32xf32>, vector<32x32xf32>, vector<2x32xf32> -> vector<2x32xf32>
    %45 = vector.extract_strided_slice %0 {offsets = [1, 0], sizes = [1, 32], strides = [1, 1]} : vector<12x64xf32> to vector<1x32xf32>
    %46 = vector.broadcast %45 : vector<1x32xf32> to vector<2x32xf32>
    %47 = arith.addf %44, %46 : vector<2x32xf32>
    %48 = vector.shape_cast %39 : vector<16x64xf32> to vector<2x8x64xf32>
    %49 = vector.extract_strided_slice %48 {offsets = [0, 0, 0], sizes = [2, 8, 32], strides = [1, 1, 1]} : vector<2x8x64xf32> to vector<2x8x32xf32>
    %50 = vector.extract_strided_slice %48 {offsets = [0, 0, 32], sizes = [2, 8, 32], strides = [1, 1, 1]} : vector<2x8x64xf32> to vector<2x8x32xf32>
    %51 = vector.extract_strided_slice %47 {offsets = [0, 0], sizes = [2, 16], strides = [1, 1]} : vector<2x32xf32> to vector<2x16xf32>
    %52 = vector.shape_cast %51 : vector<2x16xf32> to vector<2x1x16xf32>
    %53 = vector.extract_strided_slice %49 {offsets = [0, 0, 0], sizes = [2, 8, 16], strides = [1, 1, 1]} : vector<2x8x32xf32> to vector<2x8x16xf32>
    %cst_16 = arith.constant dense<0.000000e+00> : vector<2x1x8xf32>
    %54 = tpu.matmul %52, %53, %cst_16 {dimension_numbers = #tpu.dot_dimension_numbers<[2], [2], [1], [1], [0, 0, 0, 1, 1, 1], [0], [0]>} : vector<2x1x16xf32>, vector<2x8x16xf32>, vector<2x1x8xf32> -> vector<2x1x8xf32>
    %55 = vector.extract_strided_slice %47 {offsets = [0, 16], sizes = [2, 16], strides = [1, 1]} : vector<2x32xf32> to vector<2x16xf32>
    %56 = vector.shape_cast %55 : vector<2x16xf32> to vector<2x1x16xf32>
    %57 = vector.extract_strided_slice %49 {offsets = [0, 0, 16], sizes = [2, 8, 16], strides = [1, 1, 1]} : vector<2x8x32xf32> to vector<2x8x16xf32>
    %cst_17 = arith.constant dense<0.000000e+00> : vector<2x1x8xf32>
    %58 = tpu.matmul %56, %57, %cst_17 {dimension_numbers = #tpu.dot_dimension_numbers<[2], [2], [1], [1], [0, 0, 0, 1, 1, 1], [0], [0]>} : vector<2x1x16xf32>, vector<2x8x16xf32>, vector<2x1x8xf32> -> vector<2x1x8xf32>
    %59 = tpu.concatenate %54, %58 in 1 : vector<2x1x8xf32>, vector<2x1x8xf32> -> vector<2x2x8xf32>
    %cst_18 = arith.constant dense<0xFF800000> : vector<2x2xf32>
    %60 = vector.multi_reduction <maximumf>, %59, %cst_18 [2] : vector<2x2x8xf32> to vector<2x2xf32>
    %61 = vector.shape_cast %60 : vector<2x2xf32> to vector<2x2x1xf32>
    %62 = vector.broadcast %61 : vector<2x2x1xf32> to vector<2x2x8xf32>
    %63 = arith.subf %59, %62 : vector<2x2x8xf32>
    %64 = math.exp %63 : vector<2x2x8xf32>
    %cst_19 = arith.constant dense<0.000000e+00> : vector<2x2xf32>
    %65 = vector.multi_reduction <add>, %64, %cst_19 [2] : vector<2x2x8xf32> to vector<2x2xf32>
    %66 = vector.shape_cast %65 : vector<2x2xf32> to vector<2x2x1xf32>
    %67 = tpu.reciprocal %66 {approx = true} : vector<2x2x1xf32> -> vector<2x2x1xf32>
    %68 = vector.broadcast %67 : vector<2x2x1xf32> to vector<2x2x8xf32>
    %69 = arith.mulf %64, %68 : vector<2x2x8xf32>
    %70 = vector.extract_strided_slice %50 {offsets = [0, 0, 0], sizes = [2, 8, 16], strides = [1, 1, 1]} : vector<2x8x32xf32> to vector<2x8x16xf32>
    %71 = vector.extract_strided_slice %69 {offsets = [0, 0, 0], sizes = [2, 1, 8], strides = [1, 1, 1]} : vector<2x2x8xf32> to vector<2x1x8xf32>
    %cst_20 = arith.constant dense<0.000000e+00> : vector<2x1x16xf32>
    %72 = tpu.matmul %71, %70, %cst_20 {dimension_numbers = #tpu.dot_dimension_numbers<[2], [1], [1], [2], [0, 0, 0, 1, 1, 2], [0], [0]>} : vector<2x1x8xf32>, vector<2x8x16xf32>, vector<2x1x16xf32> -> vector<2x1x16xf32>
    %73 = vector.extract_strided_slice %50 {offsets = [0, 0, 16], sizes = [2, 8, 16], strides = [1, 1, 1]} : vector<2x8x32xf32> to vector<2x8x16xf32>
    %74 = vector.extract_strided_slice %69 {offsets = [0, 1, 0], sizes = [2, 1, 8], strides = [1, 1, 1]} : vector<2x2x8xf32> to vector<2x1x8xf32>
    %cst_21 = arith.constant dense<0.000000e+00> : vector<2x1x16xf32>
    %75 = tpu.matmul %74, %73, %cst_21 {dimension_numbers = #tpu.dot_dimension_numbers<[2], [1], [1], [2], [0, 0, 0, 1, 1, 2], [0], [0]>} : vector<2x1x8xf32>, vector<2x8x16xf32>, vector<2x1x16xf32> -> vector<2x1x16xf32>
    %76 = tpu.concatenate %72, %75 in 2 : vector<2x1x16xf32>, vector<2x1x16xf32> -> vector<2x1x32xf32>
    %77 = vector.shape_cast %76 : vector<2x1x32xf32> to vector<2x32xf32>
    %c96 = arith.constant 96 : index
    %c0_22 = arith.constant 0 : index
    %78 = vector.load %arg1[%c96, %c0_22] : memref<208x64xf32, #tpu.memory_space<vmem>>, vector<32x32xf32>
    %cst_23 = arith.constant dense<0.000000e+00> : vector<2x32xf32>
    %79 = tpu.matmul %77, %78, %cst_23 {dimension_numbers = #tpu.dot_dimension_numbers<[1], [0], [0], [1], [0, 0, 1, 1], [], []>} : vector<2x32xf32>, vector<32x32xf32>, vector<2x32xf32> -> vector<2x32xf32>
    %80 = vector.extract_strided_slice %0 {offsets = [3, 0], sizes = [1, 32], strides = [1, 1]} : vector<12x64xf32> to vector<1x32xf32>
    %81 = vector.broadcast %80 : vector<1x32xf32> to vector<2x32xf32>
    %82 = arith.addf %79, %81 : vector<2x32xf32>
    %83 = vector.shape_cast %82 : vector<2x32xf32> to vector<2x1x32xf32>
    %84 = vector.shape_cast %83 : vector<2x1x32xf32> to vector<2x1x32xf32>
    %85 = vector.broadcast %84 : vector<2x1x32xf32> to vector<2x8x32xf32>
    %86 = vector.shape_cast %85 : vector<2x8x32xf32> to vector<16x32xf32>
    %87 = arith.addf %34, %86 : vector<16x32xf32>
    %88 = vector.extract_strided_slice %0 {offsets = [4, 0], sizes = [1, 32], strides = [1, 1]} : vector<12x64xf32> to vector<1x32xf32>
    %89 = vector.extract_strided_slice %0 {offsets = [5, 0], sizes = [1, 32], strides = [1, 1]} : vector<12x64xf32> to vector<1x32xf32>
    %cst_24 = arith.constant dense<0.000000e+00> : vector<16xf32>
    %90 = vector.multi_reduction <add>, %87, %cst_24 [1] : vector<16x32xf32> to vector<16xf32>
    %91 = vector.shape_cast %90 : vector<16xf32> to vector<16x1xf32>
    %cst_25 = arith.constant 3.200000e+01 : f32
    %92 = vector.broadcast %cst_25 : f32 to vector<16x1xf32>
    %93 = arith.divf %91, %92 : vector<16x1xf32>
    %94 = vector.broadcast %93 : vector<16x1xf32> to vector<16x32xf32>
    %95 = arith.subf %87, %94 : vector<16x32xf32>
    %96 = arith.mulf %95, %95 : vector<16x32xf32>
    %cst_26 = arith.constant dense<0.000000e+00> : vector<16xf32>
    %97 = vector.multi_reduction <add>, %96, %cst_26 [1] : vector<16x32xf32> to vector<16xf32>
    %98 = vector.shape_cast %97 : vector<16xf32> to vector<16x1xf32>
    %cst_27 = arith.constant 3.200000e+01 : f32
    %99 = vector.broadcast %cst_27 : f32 to vector<16x1xf32>
    %100 = arith.divf %98, %99 : vector<16x1xf32>
    %101 = vector.broadcast %93 : vector<16x1xf32> to vector<16x32xf32>
    %102 = arith.subf %87, %101 : vector<16x32xf32>
    %cst_28 = arith.constant 9.99999974E-6 : f32
    %103 = vector.broadcast %cst_28 : f32 to vector<16x1xf32>
    %104 = arith.addf %100, %103 : vector<16x1xf32>
    %105 = math.rsqrt %104 : vector<16x1xf32>
    %106 = vector.broadcast %105 : vector<16x1xf32> to vector<16x32xf32>
    %107 = arith.mulf %102, %106 : vector<16x32xf32>
    %108 = vector.broadcast %88 : vector<1x32xf32> to vector<16x32xf32>
    %109 = arith.mulf %107, %108 : vector<16x32xf32>
    %110 = vector.broadcast %89 : vector<1x32xf32> to vector<16x32xf32>
    %111 = arith.addf %109, %110 : vector<16x32xf32>
    %c128 = arith.constant 128 : index
    %c0_29 = arith.constant 0 : index
    %112 = vector.load %arg1[%c128, %c0_29] : memref<208x64xf32, #tpu.memory_space<vmem>>, vector<32x32xf32>
    %cst_30 = arith.constant dense<0.000000e+00> : vector<16x32xf32>
    %113 = tpu.matmul %111, %112, %cst_30 {dimension_numbers = #tpu.dot_dimension_numbers<[1], [0], [0], [1], [0, 0, 1, 1], [], []>} : vector<16x32xf32>, vector<32x32xf32>, vector<16x32xf32> -> vector<16x32xf32>
    %114 = vector.extract_strided_slice %0 {offsets = [6, 0], sizes = [1, 32], strides = [1, 1]} : vector<12x64xf32> to vector<1x32xf32>
    %115 = vector.broadcast %114 : vector<1x32xf32> to vector<16x32xf32>
    %116 = arith.addf %113, %115 : vector<16x32xf32>
    %cst_31 = arith.constant 0.000000e+00 : f32
    %117 = vector.broadcast %cst_31 : f32 to vector<16x32xf32>
    %118 = arith.maximumf %116, %117 : vector<16x32xf32>
    %c160 = arith.constant 160 : index
    %c0_32 = arith.constant 0 : index
    %119 = vector.load %arg1[%c160, %c0_32] : memref<208x64xf32, #tpu.memory_space<vmem>>, vector<32x32xf32>
    %cst_33 = arith.constant dense<0.000000e+00> : vector<16x32xf32>
    %120 = tpu.matmul %118, %119, %cst_33 {dimension_numbers = #tpu.dot_dimension_numbers<[1], [0], [0], [1], [0, 0, 1, 1], [], []>} : vector<16x32xf32>, vector<32x32xf32>, vector<16x32xf32> -> vector<16x32xf32>
    %121 = vector.extract_strided_slice %0 {offsets = [7, 0], sizes = [1, 32], strides = [1, 1]} : vector<12x64xf32> to vector<1x32xf32>
    %122 = vector.broadcast %121 : vector<1x32xf32> to vector<16x32xf32>
    %123 = arith.addf %120, %122 : vector<16x32xf32>
    %124 = arith.addf %34, %123 : vector<16x32xf32>
    %125 = vector.extract_strided_slice %0 {offsets = [8, 0], sizes = [1, 32], strides = [1, 1]} : vector<12x64xf32> to vector<1x32xf32>
    %126 = vector.extract_strided_slice %0 {offsets = [9, 0], sizes = [1, 32], strides = [1, 1]} : vector<12x64xf32> to vector<1x32xf32>
    %cst_34 = arith.constant dense<0.000000e+00> : vector<16xf32>
    %127 = vector.multi_reduction <add>, %124, %cst_34 [1] : vector<16x32xf32> to vector<16xf32>
    %128 = vector.shape_cast %127 : vector<16xf32> to vector<16x1xf32>
    %cst_35 = arith.constant 3.200000e+01 : f32
    %129 = vector.broadcast %cst_35 : f32 to vector<16x1xf32>
    %130 = arith.divf %128, %129 : vector<16x1xf32>
    %131 = vector.broadcast %130 : vector<16x1xf32> to vector<16x32xf32>
    %132 = arith.subf %124, %131 : vector<16x32xf32>
    %133 = arith.mulf %132, %132 : vector<16x32xf32>
    %cst_36 = arith.constant dense<0.000000e+00> : vector<16xf32>
    %134 = vector.multi_reduction <add>, %133, %cst_36 [1] : vector<16x32xf32> to vector<16xf32>
    %135 = vector.shape_cast %134 : vector<16xf32> to vector<16x1xf32>
    %cst_37 = arith.constant 3.200000e+01 : f32
    %136 = vector.broadcast %cst_37 : f32 to vector<16x1xf32>
    %137 = arith.divf %135, %136 : vector<16x1xf32>
    %138 = vector.broadcast %130 : vector<16x1xf32> to vector<16x32xf32>
    %139 = arith.subf %124, %138 : vector<16x32xf32>
    %cst_38 = arith.constant 9.99999974E-6 : f32
    %140 = vector.broadcast %cst_38 : f32 to vector<16x1xf32>
    %141 = arith.addf %137, %140 : vector<16x1xf32>
    %142 = math.rsqrt %141 : vector<16x1xf32>
    %143 = vector.broadcast %142 : vector<16x1xf32> to vector<16x32xf32>
    %144 = arith.mulf %139, %143 : vector<16x32xf32>
    %145 = vector.broadcast %125 : vector<1x32xf32> to vector<16x32xf32>
    %146 = arith.mulf %144, %145 : vector<16x32xf32>
    %147 = vector.broadcast %126 : vector<1x32xf32> to vector<16x32xf32>
    %148 = arith.addf %146, %147 : vector<16x32xf32>
    %149 = vector.shape_cast %148 : vector<16x32xf32> to vector<2x8x32xf32>
    %150 = tpu.transpose %149, [1, 0, 2] : vector<2x8x32xf32> -> vector<8x2x32xf32>
    %151 = vector.shape_cast %150 : vector<8x2x32xf32> to vector<16x32xf32>
    %c96_39 = arith.constant 96 : index
    %c0_40 = arith.constant 0 : index
    %152 = vector.load %arg2[%c96_39, %c0_40] : memref<104x256xf32, #tpu.memory_space<vmem>>, vector<1x256xf32>
    %c0_41 = arith.constant 0 : index
    %c0_42 = arith.constant 0 : index
    %153 = vector.load %arg2[%c0_41, %c0_42] : memref<104x256xf32, #tpu.memory_space<vmem>>, vector<32x256xf32>
    %cst_43 = arith.constant dense<0.000000e+00> : vector<16x256xf32>
    %154 = tpu.matmul %151, %153, %cst_43 {dimension_numbers = #tpu.dot_dimension_numbers<[1], [0], [0], [1], [0, 0, 1, 1], [], []>} : vector<16x32xf32>, vector<32x256xf32>, vector<16x256xf32> -> vector<16x256xf32>
    %155 = vector.broadcast %152 : vector<1x256xf32> to vector<16x256xf32>
    %156 = arith.addf %154, %155 : vector<16x256xf32>
    %c32_44 = arith.constant 32 : index
    %c0_45 = arith.constant 0 : index
    %157 = vector.load %arg2[%c32_44, %c0_45] : memref<104x256xf32, #tpu.memory_space<vmem>>, vector<64x256xf32>
    %158 = vector.extract_strided_slice %0 {offsets = [10, 0], sizes = [1, 32], strides = [1, 1]} : vector<12x64xf32> to vector<1x32xf32>
    %159 = vector.extract_strided_slice %0 {offsets = [11, 0], sizes = [1, 1], strides = [1, 1]} : vector<12x64xf32> to vector<1x1xf32>
    %cst_46 = arith.constant 0.000000e+00 : f32
    %160 = vector.broadcast %cst_46 : f32 to vector<2x32xf32>
    %cst_47 = arith.constant 0.000000e+00 : f32
    %161 = vector.broadcast %cst_47 : f32 to vector<2x32xf32>
    %cst_48 = arith.constant 0.000000e+00 : f32
    %162 = vector.broadcast %cst_48 : f32 to vector<2x32xf32>
    %163 = vector.extract_strided_slice %156 {offsets = [0, 0], sizes = [2, 256], strides = [1, 1]} : vector<16x256xf32> to vector<2x256xf32>
    %164 = arith.negf %163 : vector<2x256xf32>
    %165 = math.exp %164 : vector<2x256xf32>
    %cst_49 = arith.constant 1.000000e+00 : f32
    %166 = vector.broadcast %cst_49 : f32 to vector<2x256xf32>
    %167 = arith.addf %166, %165 : vector<2x256xf32>
    %168 = arith.divf %166, %167 : vector<2x256xf32>
    %169 = math.tanh %163 : vector<2x256xf32>
    %170 = vector.extract_strided_slice %168 {offsets = [0, 32], sizes = [2, 32], strides = [1, 1]} : vector<2x256xf32> to vector<2x32xf32>
    %171 = arith.mulf %170, %160 : vector<2x32xf32>
    %172 = vector.extract_strided_slice %168 {offsets = [0, 0], sizes = [2, 32], strides = [1, 1]} : vector<2x256xf32> to vector<2x32xf32>
    %173 = vector.extract_strided_slice %169 {offsets = [0, 64], sizes = [2, 32], strides = [1, 1]} : vector<2x256xf32> to vector<2x32xf32>
    %174 = arith.mulf %172, %173 : vector<2x32xf32>
    %175 = arith.addf %171, %174 : vector<2x32xf32>
    %176 = vector.extract_strided_slice %168 {offsets = [0, 96], sizes = [2, 32], strides = [1, 1]} : vector<2x256xf32> to vector<2x32xf32>
    %177 = math.tanh %175 : vector<2x32xf32>
    %178 = arith.mulf %176, %177 : vector<2x32xf32>
    %179 = tpu.concatenate %178, %161 in 1 : vector<2x32xf32>, vector<2x32xf32> -> vector<2x64xf32>
    %cst_50 = arith.constant dense<0.000000e+00> : vector<2x256xf32>
    %180 = tpu.matmul %179, %157, %cst_50 {dimension_numbers = #tpu.dot_dimension_numbers<[1], [0], [0], [1], [0, 0, 1, 1], [], []>} : vector<2x64xf32>, vector<64x256xf32>, vector<2x256xf32> -> vector<2x256xf32>
    %181 = vector.extract_strided_slice %156 {offsets = [2, 0], sizes = [2, 256], strides = [1, 1]} : vector<16x256xf32> to vector<2x256xf32>
    %182 = arith.addf %180, %181 : vector<2x256xf32>
    %183 = arith.negf %182 : vector<2x256xf32>
    %184 = math.exp %183 : vector<2x256xf32>
    %cst_51 = arith.constant 1.000000e+00 : f32
    %185 = vector.broadcast %cst_51 : f32 to vector<2x256xf32>
    %186 = arith.addf %185, %184 : vector<2x256xf32>
    %187 = arith.divf %185, %186 : vector<2x256xf32>
    %188 = math.tanh %182 : vector<2x256xf32>
    %189 = vector.extract_strided_slice %187 {offsets = [0, 32], sizes = [2, 32], strides = [1, 1]} : vector<2x256xf32> to vector<2x32xf32>
    %190 = arith.mulf %189, %175 : vector<2x32xf32>
    %191 = vector.extract_strided_slice %187 {offsets = [0, 0], sizes = [2, 32], strides = [1, 1]} : vector<2x256xf32> to vector<2x32xf32>
    %192 = vector.extract_strided_slice %188 {offsets = [0, 64], sizes = [2, 32], strides = [1, 1]} : vector<2x256xf32> to vector<2x32xf32>
    %193 = arith.mulf %191, %192 : vector<2x32xf32>
    %194 = arith.addf %190, %193 : vector<2x32xf32>
    %195 = vector.extract_strided_slice %187 {offsets = [0, 96], sizes = [2, 32], strides = [1, 1]} : vector<2x256xf32> to vector<2x32xf32>
    %196 = math.tanh %194 : vector<2x32xf32>
    %197 = arith.mulf %195, %196 : vector<2x32xf32>
    %198 = vector.extract_strided_slice %187 {offsets = [0, 160], sizes = [2, 32], strides = [1, 1]} : vector<2x256xf32> to vector<2x32xf32>
    %199 = arith.mulf %198, %162 : vector<2x32xf32>
    %200 = vector.extract_strided_slice %187 {offsets = [0, 128], sizes = [2, 32], strides = [1, 1]} : vector<2x256xf32> to vector<2x32xf32>
    %201 = vector.extract_strided_slice %188 {offsets = [0, 192], sizes = [2, 32], strides = [1, 1]} : vector<2x256xf32> to vector<2x32xf32>
    %202 = arith.mulf %200, %201 : vector<2x32xf32>
    %203 = arith.addf %199, %202 : vector<2x32xf32>
    %204 = vector.extract_strided_slice %187 {offsets = [0, 224], sizes = [2, 32], strides = [1, 1]} : vector<2x256xf32> to vector<2x32xf32>
    %205 = math.tanh %203 : vector<2x32xf32>
    %206 = arith.mulf %204, %205 : vector<2x32xf32>
    %207 = vector.broadcast %158 : vector<1x32xf32> to vector<2x32xf32>
    %208 = arith.mulf %206, %207 : vector<2x32xf32>
    %cst_52 = arith.constant dense<0.000000e+00> : vector<2xf32>
    %209 = vector.multi_reduction <add>, %208, %cst_52 [1] : vector<2x32xf32> to vector<2xf32>
    %210 = vector.shape_cast %209 : vector<2xf32> to vector<2x1xf32>
    %211 = vector.broadcast %159 : vector<1x1xf32> to vector<2x1xf32>
    %212 = arith.addf %210, %211 : vector<2x1xf32>
    %213 = arith.negf %212 : vector<2x1xf32>
    %214 = math.exp %213 : vector<2x1xf32>
    %cst_53 = arith.constant 1.000000e+00 : f32
    %215 = vector.broadcast %cst_53 : f32 to vector<2x1xf32>
    %216 = arith.addf %215, %214 : vector<2x1xf32>
    %217 = arith.divf %215, %216 : vector<2x1xf32>
    %c0_54 = arith.constant 0 : index
    %c0_55 = arith.constant 0 : index
    %218 = vector.load %arg3[%c0_54, %c0_55] : memref<2x8xf32, #tpu.memory_space<vmem>>, vector<2x1xf32>
    tpu.vector_store %arg3[%c0_54, %c0_55], %217 {strides = array<i32>} : memref<2x8xf32, #tpu.memory_space<vmem>>, vector<2x1xf32>,
    %219 = tpu.concatenate %197, %206 in 1 : vector<2x32xf32>, vector<2x32xf32> -> vector<2x64xf32>
    %cst_56 = arith.constant dense<0.000000e+00> : vector<2x256xf32>
    %220 = tpu.matmul %219, %157, %cst_56 {dimension_numbers = #tpu.dot_dimension_numbers<[1], [0], [0], [1], [0, 0, 1, 1], [], []>} : vector<2x64xf32>, vector<64x256xf32>, vector<2x256xf32> -> vector<2x256xf32>
    %221 = vector.extract_strided_slice %156 {offsets = [4, 0], sizes = [2, 256], strides = [1, 1]} : vector<16x256xf32> to vector<2x256xf32>
    %222 = arith.addf %220, %221 : vector<2x256xf32>
    %223 = arith.negf %222 : vector<2x256xf32>
    %224 = math.exp %223 : vector<2x256xf32>
    %cst_57 = arith.constant 1.000000e+00 : f32
    %225 = vector.broadcast %cst_57 : f32 to vector<2x256xf32>
    %226 = arith.addf %225, %224 : vector<2x256xf32>
    %227 = arith.divf %225, %226 : vector<2x256xf32>
    %228 = math.tanh %222 : vector<2x256xf32>
    %229 = vector.extract_strided_slice %227 {offsets = [0, 32], sizes = [2, 32], strides = [1, 1]} : vector<2x256xf32> to vector<2x32xf32>
    %230 = arith.mulf %229, %194 : vector<2x32xf32>
    %231 = vector.extract_strided_slice %227 {offsets = [0, 0], sizes = [2, 32], strides = [1, 1]} : vector<2x256xf32> to vector<2x32xf32>
    %232 = vector.extract_strided_slice %228 {offsets = [0, 64], sizes = [2, 32], strides = [1, 1]} : vector<2x256xf32> to vector<2x32xf32>
    %233 = arith.mulf %231, %232 : vector<2x32xf32>
    %234 = arith.addf %230, %233 : vector<2x32xf32>
    %235 = vector.extract_strided_slice %227 {offsets = [0, 96], sizes = [2, 32], strides = [1, 1]} : vector<2x256xf32> to vector<2x32xf32>
    %236 = math.tanh %234 : vector<2x32xf32>
    %237 = arith.mulf %235, %236 : vector<2x32xf32>
    %238 = vector.extract_strided_slice %227 {offsets = [0, 160], sizes = [2, 32], strides = [1, 1]} : vector<2x256xf32> to vector<2x32xf32>
    %239 = arith.mulf %238, %203 : vector<2x32xf32>
    %240 = vector.extract_strided_slice %227 {offsets = [0, 128], sizes = [2, 32], strides = [1, 1]} : vector<2x256xf32> to vector<2x32xf32>
    %241 = vector.extract_strided_slice %228 {offsets = [0, 192], sizes = [2, 32], strides = [1, 1]} : vector<2x256xf32> to vector<2x32xf32>
    %242 = arith.mulf %240, %241 : vector<2x32xf32>
    %243 = arith.addf %239, %242 : vector<2x32xf32>
    %244 = vector.extract_strided_slice %227 {offsets = [0, 224], sizes = [2, 32], strides = [1, 1]} : vector<2x256xf32> to vector<2x32xf32>
    %245 = math.tanh %243 : vector<2x32xf32>
    %246 = arith.mulf %244, %245 : vector<2x32xf32>
    %247 = vector.broadcast %158 : vector<1x32xf32> to vector<2x32xf32>
    %248 = arith.mulf %246, %247 : vector<2x32xf32>
    %cst_58 = arith.constant dense<0.000000e+00> : vector<2xf32>
    %249 = vector.multi_reduction <add>, %248, %cst_58 [1] : vector<2x32xf32> to vector<2xf32>
    %250 = vector.shape_cast %249 : vector<2xf32> to vector<2x1xf32>
    %251 = vector.broadcast %159 : vector<1x1xf32> to vector<2x1xf32>
    %252 = arith.addf %250, %251 : vector<2x1xf32>
    %253 = arith.negf %252 : vector<2x1xf32>
    %254 = math.exp %253 : vector<2x1xf32>
    %cst_59 = arith.constant 1.000000e+00 : f32
    %255 = vector.broadcast %cst_59 : f32 to vector<2x1xf32>
    %256 = arith.addf %255, %254 : vector<2x1xf32>
    %257 = arith.divf %255, %256 : vector<2x1xf32>
    %c0_60 = arith.constant 0 : index
    %c1 = arith.constant 1 : index
    %258 = vector.load %arg3[%c0_60, %c1] : memref<2x8xf32, #tpu.memory_space<vmem>>, vector<2x1xf32>
    tpu.vector_store %arg3[%c0_60, %c1], %257 {strides = array<i32>} : memref<2x8xf32, #tpu.memory_space<vmem>>, vector<2x1xf32>,
    %259 = tpu.concatenate %237, %246 in 1 : vector<2x32xf32>, vector<2x32xf32> -> vector<2x64xf32>
    %cst_61 = arith.constant dense<0.000000e+00> : vector<2x256xf32>
    %260 = tpu.matmul %259, %157, %cst_61 {dimension_numbers = #tpu.dot_dimension_numbers<[1], [0], [0], [1], [0, 0, 1, 1], [], []>} : vector<2x64xf32>, vector<64x256xf32>, vector<2x256xf32> -> vector<2x256xf32>
    %261 = vector.extract_strided_slice %156 {offsets = [6, 0], sizes = [2, 256], strides = [1, 1]} : vector<16x256xf32> to vector<2x256xf32>
    %262 = arith.addf %260, %261 : vector<2x256xf32>
    %263 = arith.negf %262 : vector<2x256xf32>
    %264 = math.exp %263 : vector<2x256xf32>
    %cst_62 = arith.constant 1.000000e+00 : f32
    %265 = vector.broadcast %cst_62 : f32 to vector<2x256xf32>
    %266 = arith.addf %265, %264 : vector<2x256xf32>
    %267 = arith.divf %265, %266 : vector<2x256xf32>
    %268 = math.tanh %262 : vector<2x256xf32>
    %269 = vector.extract_strided_slice %267 {offsets = [0, 32], sizes = [2, 32], strides = [1, 1]} : vector<2x256xf32> to vector<2x32xf32>
    %270 = arith.mulf %269, %234 : vector<2x32xf32>
    %271 = vector.extract_strided_slice %267 {offsets = [0, 0], sizes = [2, 32], strides = [1, 1]} : vector<2x256xf32> to vector<2x32xf32>
    %272 = vector.extract_strided_slice %268 {offsets = [0, 64], sizes = [2, 32], strides = [1, 1]} : vector<2x256xf32> to vector<2x32xf32>
    %273 = arith.mulf %271, %272 : vector<2x32xf32>
    %274 = arith.addf %270, %273 : vector<2x32xf32>
    %275 = vector.extract_strided_slice %267 {offsets = [0, 96], sizes = [2, 32], strides = [1, 1]} : vector<2x256xf32> to vector<2x32xf32>
    %276 = math.tanh %274 : vector<2x32xf32>
    %277 = arith.mulf %275, %276 : vector<2x32xf32>
    %278 = vector.extract_strided_slice %267 {offsets = [0, 160], sizes = [2, 32], strides = [1, 1]} : vector<2x256xf32> to vector<2x32xf32>
    %279 = arith.mulf %278, %243 : vector<2x32xf32>
    %280 = vector.extract_strided_slice %267 {offsets = [0, 128], sizes = [2, 32], strides = [1, 1]} : vector<2x256xf32> to vector<2x32xf32>
    %281 = vector.extract_strided_slice %268 {offsets = [0, 192], sizes = [2, 32], strides = [1, 1]} : vector<2x256xf32> to vector<2x32xf32>
    %282 = arith.mulf %280, %281 : vector<2x32xf32>
    %283 = arith.addf %279, %282 : vector<2x32xf32>
    %284 = vector.extract_strided_slice %267 {offsets = [0, 224], sizes = [2, 32], strides = [1, 1]} : vector<2x256xf32> to vector<2x32xf32>
    %285 = math.tanh %283 : vector<2x32xf32>
    %286 = arith.mulf %284, %285 : vector<2x32xf32>
    %287 = vector.broadcast %158 : vector<1x32xf32> to vector<2x32xf32>
    %288 = arith.mulf %286, %287 : vector<2x32xf32>
    %cst_63 = arith.constant dense<0.000000e+00> : vector<2xf32>
    %289 = vector.multi_reduction <add>, %288, %cst_63 [1] : vector<2x32xf32> to vector<2xf32>
    %290 = vector.shape_cast %289 : vector<2xf32> to vector<2x1xf32>
    %291 = vector.broadcast %159 : vector<1x1xf32> to vector<2x1xf32>
    %292 = arith.addf %290, %291 : vector<2x1xf32>
    %293 = arith.negf %292 : vector<2x1xf32>
    %294 = math.exp %293 : vector<2x1xf32>
    %cst_64 = arith.constant 1.000000e+00 : f32
    %295 = vector.broadcast %cst_64 : f32 to vector<2x1xf32>
    %296 = arith.addf %295, %294 : vector<2x1xf32>
    %297 = arith.divf %295, %296 : vector<2x1xf32>
    %c0_65 = arith.constant 0 : index
    %c2 = arith.constant 2 : index
    %298 = vector.load %arg3[%c0_65, %c2] : memref<2x8xf32, #tpu.memory_space<vmem>>, vector<2x1xf32>
    tpu.vector_store %arg3[%c0_65, %c2], %297 {strides = array<i32>} : memref<2x8xf32, #tpu.memory_space<vmem>>, vector<2x1xf32>,
    %299 = tpu.concatenate %277, %286 in 1 : vector<2x32xf32>, vector<2x32xf32> -> vector<2x64xf32>
    %cst_66 = arith.constant dense<0.000000e+00> : vector<2x256xf32>
    %300 = tpu.matmul %299, %157, %cst_66 {dimension_numbers = #tpu.dot_dimension_numbers<[1], [0], [0], [1], [0, 0, 1, 1], [], []>} : vector<2x64xf32>, vector<64x256xf32>, vector<2x256xf32> -> vector<2x256xf32>
    %301 = vector.extract_strided_slice %156 {offsets = [8, 0], sizes = [2, 256], strides = [1, 1]} : vector<16x256xf32> to vector<2x256xf32>
    %302 = arith.addf %300, %301 : vector<2x256xf32>
    %303 = arith.negf %302 : vector<2x256xf32>
    %304 = math.exp %303 : vector<2x256xf32>
    %cst_67 = arith.constant 1.000000e+00 : f32
    %305 = vector.broadcast %cst_67 : f32 to vector<2x256xf32>
    %306 = arith.addf %305, %304 : vector<2x256xf32>
    %307 = arith.divf %305, %306 : vector<2x256xf32>
    %308 = math.tanh %302 : vector<2x256xf32>
    %309 = vector.extract_strided_slice %307 {offsets = [0, 32], sizes = [2, 32], strides = [1, 1]} : vector<2x256xf32> to vector<2x32xf32>
    %310 = arith.mulf %309, %274 : vector<2x32xf32>
    %311 = vector.extract_strided_slice %307 {offsets = [0, 0], sizes = [2, 32], strides = [1, 1]} : vector<2x256xf32> to vector<2x32xf32>
    %312 = vector.extract_strided_slice %308 {offsets = [0, 64], sizes = [2, 32], strides = [1, 1]} : vector<2x256xf32> to vector<2x32xf32>
    %313 = arith.mulf %311, %312 : vector<2x32xf32>
    %314 = arith.addf %310, %313 : vector<2x32xf32>
    %315 = vector.extract_strided_slice %307 {offsets = [0, 96], sizes = [2, 32], strides = [1, 1]} : vector<2x256xf32> to vector<2x32xf32>
    %316 = math.tanh %314 : vector<2x32xf32>
    %317 = arith.mulf %315, %316 : vector<2x32xf32>
    %318 = vector.extract_strided_slice %307 {offsets = [0, 160], sizes = [2, 32], strides = [1, 1]} : vector<2x256xf32> to vector<2x32xf32>
    %319 = arith.mulf %318, %283 : vector<2x32xf32>
    %320 = vector.extract_strided_slice %307 {offsets = [0, 128], sizes = [2, 32], strides = [1, 1]} : vector<2x256xf32> to vector<2x32xf32>
    %321 = vector.extract_strided_slice %308 {offsets = [0, 192], sizes = [2, 32], strides = [1, 1]} : vector<2x256xf32> to vector<2x32xf32>
    %322 = arith.mulf %320, %321 : vector<2x32xf32>
    %323 = arith.addf %319, %322 : vector<2x32xf32>
    %324 = vector.extract_strided_slice %307 {offsets = [0, 224], sizes = [2, 32], strides = [1, 1]} : vector<2x256xf32> to vector<2x32xf32>
    %325 = math.tanh %323 : vector<2x32xf32>
    %326 = arith.mulf %324, %325 : vector<2x32xf32>
    %327 = vector.broadcast %158 : vector<1x32xf32> to vector<2x32xf32>
    %328 = arith.mulf %326, %327 : vector<2x32xf32>
    %cst_68 = arith.constant dense<0.000000e+00> : vector<2xf32>
    %329 = vector.multi_reduction <add>, %328, %cst_68 [1] : vector<2x32xf32> to vector<2xf32>
    %330 = vector.shape_cast %329 : vector<2xf32> to vector<2x1xf32>
    %331 = vector.broadcast %159 : vector<1x1xf32> to vector<2x1xf32>
    %332 = arith.addf %330, %331 : vector<2x1xf32>
    %333 = arith.negf %332 : vector<2x1xf32>
    %334 = math.exp %333 : vector<2x1xf32>
    %cst_69 = arith.constant 1.000000e+00 : f32
    %335 = vector.broadcast %cst_69 : f32 to vector<2x1xf32>
    %336 = arith.addf %335, %334 : vector<2x1xf32>
    %337 = arith.divf %335, %336 : vector<2x1xf32>
    %c0_70 = arith.constant 0 : index
    %c3 = arith.constant 3 : index
    %338 = vector.load %arg3[%c0_70, %c3] : memref<2x8xf32, #tpu.memory_space<vmem>>, vector<2x1xf32>
    tpu.vector_store %arg3[%c0_70, %c3], %337 {strides = array<i32>} : memref<2x8xf32, #tpu.memory_space<vmem>>, vector<2x1xf32>,
    %339 = tpu.concatenate %317, %326 in 1 : vector<2x32xf32>, vector<2x32xf32> -> vector<2x64xf32>
    %cst_71 = arith.constant dense<0.000000e+00> : vector<2x256xf32>
    %340 = tpu.matmul %339, %157, %cst_71 {dimension_numbers = #tpu.dot_dimension_numbers<[1], [0], [0], [1], [0, 0, 1, 1], [], []>} : vector<2x64xf32>, vector<64x256xf32>, vector<2x256xf32> -> vector<2x256xf32>
    %341 = vector.extract_strided_slice %156 {offsets = [10, 0], sizes = [2, 256], strides = [1, 1]} : vector<16x256xf32> to vector<2x256xf32>
    %342 = arith.addf %340, %341 : vector<2x256xf32>
    %343 = arith.negf %342 : vector<2x256xf32>
    %344 = math.exp %343 : vector<2x256xf32>
    %cst_72 = arith.constant 1.000000e+00 : f32
    %345 = vector.broadcast %cst_72 : f32 to vector<2x256xf32>
    %346 = arith.addf %345, %344 : vector<2x256xf32>
    %347 = arith.divf %345, %346 : vector<2x256xf32>
    %348 = math.tanh %342 : vector<2x256xf32>
    %349 = vector.extract_strided_slice %347 {offsets = [0, 32], sizes = [2, 32], strides = [1, 1]} : vector<2x256xf32> to vector<2x32xf32>
    %350 = arith.mulf %349, %314 : vector<2x32xf32>
    %351 = vector.extract_strided_slice %347 {offsets = [0, 0], sizes = [2, 32], strides = [1, 1]} : vector<2x256xf32> to vector<2x32xf32>
    %352 = vector.extract_strided_slice %348 {offsets = [0, 64], sizes = [2, 32], strides = [1, 1]} : vector<2x256xf32> to vector<2x32xf32>
    %353 = arith.mulf %351, %352 : vector<2x32xf32>
    %354 = arith.addf %350, %353 : vector<2x32xf32>
    %355 = vector.extract_strided_slice %347 {offsets = [0, 96], sizes = [2, 32], strides = [1, 1]} : vector<2x256xf32> to vector<2x32xf32>
    %356 = math.tanh %354 : vector<2x32xf32>
    %357 = arith.mulf %355, %356 : vector<2x32xf32>
    %358 = vector.extract_strided_slice %347 {offsets = [0, 160], sizes = [2, 32], strides = [1, 1]} : vector<2x256xf32> to vector<2x32xf32>
    %359 = arith.mulf %358, %323 : vector<2x32xf32>
    %360 = vector.extract_strided_slice %347 {offsets = [0, 128], sizes = [2, 32], strides = [1, 1]} : vector<2x256xf32> to vector<2x32xf32>
    %361 = vector.extract_strided_slice %348 {offsets = [0, 192], sizes = [2, 32], strides = [1, 1]} : vector<2x256xf32> to vector<2x32xf32>
    %362 = arith.mulf %360, %361 : vector<2x32xf32>
    %363 = arith.addf %359, %362 : vector<2x32xf32>
    %364 = vector.extract_strided_slice %347 {offsets = [0, 224], sizes = [2, 32], strides = [1, 1]} : vector<2x256xf32> to vector<2x32xf32>
    %365 = math.tanh %363 : vector<2x32xf32>
    %366 = arith.mulf %364, %365 : vector<2x32xf32>
    %367 = vector.broadcast %158 : vector<1x32xf32> to vector<2x32xf32>
    %368 = arith.mulf %366, %367 : vector<2x32xf32>
    %cst_73 = arith.constant dense<0.000000e+00> : vector<2xf32>
    %369 = vector.multi_reduction <add>, %368, %cst_73 [1] : vector<2x32xf32> to vector<2xf32>
    %370 = vector.shape_cast %369 : vector<2xf32> to vector<2x1xf32>
    %371 = vector.broadcast %159 : vector<1x1xf32> to vector<2x1xf32>
    %372 = arith.addf %370, %371 : vector<2x1xf32>
    %373 = arith.negf %372 : vector<2x1xf32>
    %374 = math.exp %373 : vector<2x1xf32>
    %cst_74 = arith.constant 1.000000e+00 : f32
    %375 = vector.broadcast %cst_74 : f32 to vector<2x1xf32>
    %376 = arith.addf %375, %374 : vector<2x1xf32>
    %377 = arith.divf %375, %376 : vector<2x1xf32>
    %c0_75 = arith.constant 0 : index
    %c4 = arith.constant 4 : index
    %378 = vector.load %arg3[%c0_75, %c4] : memref<2x8xf32, #tpu.memory_space<vmem>>, vector<2x1xf32>
    tpu.vector_store %arg3[%c0_75, %c4], %377 {strides = array<i32>} : memref<2x8xf32, #tpu.memory_space<vmem>>, vector<2x1xf32>,
    %379 = tpu.concatenate %357, %366 in 1 : vector<2x32xf32>, vector<2x32xf32> -> vector<2x64xf32>
    %cst_76 = arith.constant dense<0.000000e+00> : vector<2x256xf32>
    %380 = tpu.matmul %379, %157, %cst_76 {dimension_numbers = #tpu.dot_dimension_numbers<[1], [0], [0], [1], [0, 0, 1, 1], [], []>} : vector<2x64xf32>, vector<64x256xf32>, vector<2x256xf32> -> vector<2x256xf32>
    %381 = vector.extract_strided_slice %156 {offsets = [12, 0], sizes = [2, 256], strides = [1, 1]} : vector<16x256xf32> to vector<2x256xf32>
    %382 = arith.addf %380, %381 : vector<2x256xf32>
    %383 = arith.negf %382 : vector<2x256xf32>
    %384 = math.exp %383 : vector<2x256xf32>
    %cst_77 = arith.constant 1.000000e+00 : f32
    %385 = vector.broadcast %cst_77 : f32 to vector<2x256xf32>
    %386 = arith.addf %385, %384 : vector<2x256xf32>
    %387 = arith.divf %385, %386 : vector<2x256xf32>
    %388 = math.tanh %382 : vector<2x256xf32>
    %389 = vector.extract_strided_slice %387 {offsets = [0, 32], sizes = [2, 32], strides = [1, 1]} : vector<2x256xf32> to vector<2x32xf32>
    %390 = arith.mulf %389, %354 : vector<2x32xf32>
    %391 = vector.extract_strided_slice %387 {offsets = [0, 0], sizes = [2, 32], strides = [1, 1]} : vector<2x256xf32> to vector<2x32xf32>
    %392 = vector.extract_strided_slice %388 {offsets = [0, 64], sizes = [2, 32], strides = [1, 1]} : vector<2x256xf32> to vector<2x32xf32>
    %393 = arith.mulf %391, %392 : vector<2x32xf32>
    %394 = arith.addf %390, %393 : vector<2x32xf32>
    %395 = vector.extract_strided_slice %387 {offsets = [0, 96], sizes = [2, 32], strides = [1, 1]} : vector<2x256xf32> to vector<2x32xf32>
    %396 = math.tanh %394 : vector<2x32xf32>
    %397 = arith.mulf %395, %396 : vector<2x32xf32>
    %398 = vector.extract_strided_slice %387 {offsets = [0, 160], sizes = [2, 32], strides = [1, 1]} : vector<2x256xf32> to vector<2x32xf32>
    %399 = arith.mulf %398, %363 : vector<2x32xf32>
    %400 = vector.extract_strided_slice %387 {offsets = [0, 128], sizes = [2, 32], strides = [1, 1]} : vector<2x256xf32> to vector<2x32xf32>
    %401 = vector.extract_strided_slice %388 {offsets = [0, 192], sizes = [2, 32], strides = [1, 1]} : vector<2x256xf32> to vector<2x32xf32>
    %402 = arith.mulf %400, %401 : vector<2x32xf32>
    %403 = arith.addf %399, %402 : vector<2x32xf32>
    %404 = vector.extract_strided_slice %387 {offsets = [0, 224], sizes = [2, 32], strides = [1, 1]} : vector<2x256xf32> to vector<2x32xf32>
    %405 = math.tanh %403 : vector<2x32xf32>
    %406 = arith.mulf %404, %405 : vector<2x32xf32>
    %407 = vector.broadcast %158 : vector<1x32xf32> to vector<2x32xf32>
    %408 = arith.mulf %406, %407 : vector<2x32xf32>
    %cst_78 = arith.constant dense<0.000000e+00> : vector<2xf32>
    %409 = vector.multi_reduction <add>, %408, %cst_78 [1] : vector<2x32xf32> to vector<2xf32>
    %410 = vector.shape_cast %409 : vector<2xf32> to vector<2x1xf32>
    %411 = vector.broadcast %159 : vector<1x1xf32> to vector<2x1xf32>
    %412 = arith.addf %410, %411 : vector<2x1xf32>
    %413 = arith.negf %412 : vector<2x1xf32>
    %414 = math.exp %413 : vector<2x1xf32>
    %cst_79 = arith.constant 1.000000e+00 : f32
    %415 = vector.broadcast %cst_79 : f32 to vector<2x1xf32>
    %416 = arith.addf %415, %414 : vector<2x1xf32>
    %417 = arith.divf %415, %416 : vector<2x1xf32>
    %c0_80 = arith.constant 0 : index
    %c5 = arith.constant 5 : index
    %418 = vector.load %arg3[%c0_80, %c5] : memref<2x8xf32, #tpu.memory_space<vmem>>, vector<2x1xf32>
    tpu.vector_store %arg3[%c0_80, %c5], %417 {strides = array<i32>} : memref<2x8xf32, #tpu.memory_space<vmem>>, vector<2x1xf32>,
    %419 = tpu.concatenate %397, %406 in 1 : vector<2x32xf32>, vector<2x32xf32> -> vector<2x64xf32>
    %cst_81 = arith.constant dense<0.000000e+00> : vector<2x256xf32>
    %420 = tpu.matmul %419, %157, %cst_81 {dimension_numbers = #tpu.dot_dimension_numbers<[1], [0], [0], [1], [0, 0, 1, 1], [], []>} : vector<2x64xf32>, vector<64x256xf32>, vector<2x256xf32> -> vector<2x256xf32>
    %421 = vector.extract_strided_slice %156 {offsets = [14, 0], sizes = [2, 256], strides = [1, 1]} : vector<16x256xf32> to vector<2x256xf32>
    %422 = arith.addf %420, %421 : vector<2x256xf32>
    %423 = arith.negf %422 : vector<2x256xf32>
    %424 = math.exp %423 : vector<2x256xf32>
    %cst_82 = arith.constant 1.000000e+00 : f32
    %425 = vector.broadcast %cst_82 : f32 to vector<2x256xf32>
    %426 = arith.addf %425, %424 : vector<2x256xf32>
    %427 = arith.divf %425, %426 : vector<2x256xf32>
    %428 = math.tanh %422 : vector<2x256xf32>
    %429 = vector.extract_strided_slice %427 {offsets = [0, 32], sizes = [2, 32], strides = [1, 1]} : vector<2x256xf32> to vector<2x32xf32>
    %430 = arith.mulf %429, %394 : vector<2x32xf32>
    %431 = vector.extract_strided_slice %427 {offsets = [0, 0], sizes = [2, 32], strides = [1, 1]} : vector<2x256xf32> to vector<2x32xf32>
    %432 = vector.extract_strided_slice %428 {offsets = [0, 64], sizes = [2, 32], strides = [1, 1]} : vector<2x256xf32> to vector<2x32xf32>
    %433 = arith.mulf %431, %432 : vector<2x32xf32>
    %434 = arith.addf %430, %433 : vector<2x32xf32>
    %435 = vector.extract_strided_slice %427 {offsets = [0, 96], sizes = [2, 32], strides = [1, 1]} : vector<2x256xf32> to vector<2x32xf32>
    %436 = math.tanh %434 : vector<2x32xf32>
    %437 = arith.mulf %435, %436 : vector<2x32xf32>
    %438 = vector.extract_strided_slice %427 {offsets = [0, 160], sizes = [2, 32], strides = [1, 1]} : vector<2x256xf32> to vector<2x32xf32>
    %439 = arith.mulf %438, %403 : vector<2x32xf32>
    %440 = vector.extract_strided_slice %427 {offsets = [0, 128], sizes = [2, 32], strides = [1, 1]} : vector<2x256xf32> to vector<2x32xf32>
    %441 = vector.extract_strided_slice %428 {offsets = [0, 192], sizes = [2, 32], strides = [1, 1]} : vector<2x256xf32> to vector<2x32xf32>
    %442 = arith.mulf %440, %441 : vector<2x32xf32>
    %443 = arith.addf %439, %442 : vector<2x32xf32>
    %444 = vector.extract_strided_slice %427 {offsets = [0, 224], sizes = [2, 32], strides = [1, 1]} : vector<2x256xf32> to vector<2x32xf32>
    %445 = math.tanh %443 : vector<2x32xf32>
    %446 = arith.mulf %444, %445 : vector<2x32xf32>
    %447 = vector.broadcast %158 : vector<1x32xf32> to vector<2x32xf32>
    %448 = arith.mulf %446, %447 : vector<2x32xf32>
    %cst_83 = arith.constant dense<0.000000e+00> : vector<2xf32>
    %449 = vector.multi_reduction <add>, %448, %cst_83 [1] : vector<2x32xf32> to vector<2xf32>
    %450 = vector.shape_cast %449 : vector<2xf32> to vector<2x1xf32>
    %451 = vector.broadcast %159 : vector<1x1xf32> to vector<2x1xf32>
    %452 = arith.addf %450, %451 : vector<2x1xf32>
    %453 = arith.negf %452 : vector<2x1xf32>
    %454 = math.exp %453 : vector<2x1xf32>
    %cst_84 = arith.constant 1.000000e+00 : f32
    %455 = vector.broadcast %cst_84 : f32 to vector<2x1xf32>
    %456 = arith.addf %455, %454 : vector<2x1xf32>
    %457 = arith.divf %455, %456 : vector<2x1xf32>
    %c0_85 = arith.constant 0 : index
    %c6 = arith.constant 6 : index
    %458 = vector.load %arg3[%c0_85, %c6] : memref<2x8xf32, #tpu.memory_space<vmem>>, vector<2x1xf32>
    tpu.vector_store %arg3[%c0_85, %c6], %457 {strides = array<i32>} : memref<2x8xf32, #tpu.memory_space<vmem>>, vector<2x1xf32>,
    %459 = tpu.concatenate %437, %446 in 1 : vector<2x32xf32>, vector<2x32xf32> -> vector<2x64xf32>
    %cst_86 = arith.constant dense<0.000000e+00> : vector<2x256xf32>
    %460 = tpu.matmul %459, %157, %cst_86 {dimension_numbers = #tpu.dot_dimension_numbers<[1], [0], [0], [1], [0, 0, 1, 1], [], []>} : vector<2x64xf32>, vector<64x256xf32>, vector<2x256xf32> -> vector<2x256xf32>
    %461 = vector.broadcast %152 : vector<1x256xf32> to vector<2x256xf32>
    %462 = arith.addf %460, %461 : vector<2x256xf32>
    %463 = arith.negf %462 : vector<2x256xf32>
    %464 = math.exp %463 : vector<2x256xf32>
    %cst_87 = arith.constant 1.000000e+00 : f32
    %465 = vector.broadcast %cst_87 : f32 to vector<2x256xf32>
    %466 = arith.addf %465, %464 : vector<2x256xf32>
    %467 = arith.divf %465, %466 : vector<2x256xf32>
    %468 = math.tanh %462 : vector<2x256xf32>
    %469 = vector.extract_strided_slice %467 {offsets = [0, 160], sizes = [2, 32], strides = [1, 1]} : vector<2x256xf32> to vector<2x32xf32>
    %470 = arith.mulf %469, %443 : vector<2x32xf32>
    %471 = vector.extract_strided_slice %467 {offsets = [0, 128], sizes = [2, 32], strides = [1, 1]} : vector<2x256xf32> to vector<2x32xf32>
    %472 = vector.extract_strided_slice %468 {offsets = [0, 192], sizes = [2, 32], strides = [1, 1]} : vector<2x256xf32> to vector<2x32xf32>
    %473 = arith.mulf %471, %472 : vector<2x32xf32>
    %474 = arith.addf %470, %473 : vector<2x32xf32>
    %475 = vector.extract_strided_slice %467 {offsets = [0, 224], sizes = [2, 32], strides = [1, 1]} : vector<2x256xf32> to vector<2x32xf32>
    %476 = math.tanh %474 : vector<2x32xf32>
    %477 = arith.mulf %475, %476 : vector<2x32xf32>
    %478 = vector.broadcast %158 : vector<1x32xf32> to vector<2x32xf32>
    %479 = arith.mulf %477, %478 : vector<2x32xf32>
    %cst_88 = arith.constant dense<0.000000e+00> : vector<2xf32>
    %480 = vector.multi_reduction <add>, %479, %cst_88 [1] : vector<2x32xf32> to vector<2xf32>
    %481 = vector.shape_cast %480 : vector<2xf32> to vector<2x1xf32>
    %482 = vector.broadcast %159 : vector<1x1xf32> to vector<2x1xf32>
    %483 = arith.addf %481, %482 : vector<2x1xf32>
    %484 = arith.negf %483 : vector<2x1xf32>
    %485 = math.exp %484 : vector<2x1xf32>
    %cst_89 = arith.constant 1.000000e+00 : f32
    %486 = vector.broadcast %cst_89 : f32 to vector<2x1xf32>
    %487 = arith.addf %486, %485 : vector<2x1xf32>
    %488 = arith.divf %486, %487 : vector<2x1xf32>
    %c0_90 = arith.constant 0 : index
    %c7 = arith.constant 7 : index
    %489 = vector.load %arg3[%c0_90, %c7] : memref<2x8xf32, #tpu.memory_space<vmem>>, vector<2x1xf32>
    tpu.vector_store %arg3[%c0_90, %c7], %488 {strides = array<i32>} : memref<2x8xf32, #tpu.memory_space<vmem>>, vector<2x1xf32>,
    return
  }
}

</mosaic_0001>

<bundles_post_ra>
// kernel: last_query_forward.1
= control target key start
LH: loop header
LB: loop body
LE: loop exit
PB: predicated region body
PF: predicated region fallthrough
CT: control target
= control target key end

     0   :  { %v3328_v2 = vmov 0   ;;  %s4083_s0 = inlined_call_operand.vmem [shape: s32[16,4], index: 0, kind: input, shape index: {}]   ;;  %s4084_s1 = inlined_call_operand.vmem [shape: f32[208,64], index: 1, kind: input, shape index: {}]   ;;  %s4085_s2 = inlined_call_operand.vmem [shape: f32[104,256], index: 2, kind: input, shape index: {}]   ;;  %s4086_s3 = inlined_call_operand.hbm [shape: f32[2,8], index: 3, kind: output, shape index: {}]  }
   0x1   :  { %v18_v0 = vld [vmem:[%s4083_s0 + $0x8] sm:$0xff]  ;;  %v17_v1 = vld [vmem:[%s4083_s0] sm:$0xff]  ;;  %3123 = vset.pattern.permute.xlu1 %v3328_v2  ;;  %3121 = vset.pattern.permute.xlu0 %v3328_v2 }
   0x2   :  { %8 = vsyncpa [#allocation3], 0  ;;  %25 = vperm.xlu1 %3123, %v18_v0   ;;  %22 = vperm.xlu0 %3121, %v17_v1   ;;  %v3329_v3 = vmov 1   ;;  %v3330_v4 = vmov 2   ;;  %v70_v5 = vld [vmem:[%s4084_s1 + $0x18] sm:$0xff]  ;;  %v69_v6 = vld [vmem:[%s4084_s1 + $0x10] sm:$0xff]  ;;  %v19_v12 = vlaneseq }
   0x3   :  { %2992 = vmatprep.subr.mxu0 %v70_v5  ;;  %v3331_v7 = vmov 3   ;;  %v68_v8 = vld [vmem:[%s4084_s1 + $0x8] sm:$0xff]  ;;  %v67_v9 = vld [vmem:[%s4084_s1] sm:$0xff]  ;;  %v160_v10 = vld [vmem:[%s4084_s1 + $0x58] sm:$0xff]  ;;  %v3332_v11 = vmov 0.0   ;;  %vm75_vm7 = vcmask 261120  }
   0x4   :  { %2993 = vmatpush3.msra.mxu0 %v70_v5  ;;  %3003 = vmatprep.subr.mxu1 %v160_v10  ;;  %v20_v15 = vand.u32 127, %v19_v12  ;;  %v159_v36 = vld [vmem:[%s4084_s1 + $0x50] sm:$0xff]  ;;  %v255_v37 = vld [vmem:[%s4084_s1 + $0x38] sm:$0xff]  ;;  %v158_v38 = vld [vmem:[%s4084_s1 + $0x48] sm:$0xff]  ;;  %vm3333_vm9 = vmmov 0   ;;  %v3431_v43 = vshrl.u32 %v19_v12, 7 }
   0x5   :  { %2994 = vmatprep.subr.mxu0 %v69_v6  ;;  %3004 = vmatpush3.msra.mxu1 %v160_v10  ;;  %v254_v39 = vld [vmem:[%s4084_s1 + $0x30] sm:$0xff]  ;;  %v157_v40 = vld [vmem:[%s4084_s1 + $0x40] sm:$0xff]  ;;  %v253_v41 = vld [vmem:[%s4084_s1 + $0x28] sm:$0xff]  ;;  %vm250_vm10 = vcmask 1040384   ;;  %v3334_v55 = vmov 1966171168  }
   0x6   :  { %3124 = vset.pattern.permute.xlu1 %v3329_v3  ;;  %3122 = vset.pattern.permute.xlu0 %v3329_v3  ;;  %v252_v42 = vld [vmem:[%s4084_s1 + $0x20] sm:$0xff]  ;;  %v3434_v44 = vsub.s32 0, %v3431_v43  ;;  %v163_v54 = vsub.s32 2, %v3431_v43  ;;  %v335_v56 = vunpack.c.l.s4 %v3334_v55  ;;  %v3461_v57 = vsub.s32 1, %v3431_v43  ;;  %s3335_s14 = smov 112   ;;  %s3336_s15 = smov 96  }
   0x7   :  { %35 = vperm.xlu1 %3124, %v18_v0   ;;  %32 = vperm.xlu0 %3122, %v17_v1   ;;  %v3439_v45 = vld [vmem:[%s4084_s1 + $0xc0] sm:$0xff]  ;;  %vm356_vm11 = vcmask 130048   ;;  %vm679_vm12 = vcmask 58368   ;;  %s3337_s16 = smov 80   ;;  %vm705_vm13 = vcmask 64512   ;;  %s3338_s24 = smov 16  }
   0x8   :  { %2995 = vmatpush3.msra.mxu0 %v69_v6  ;;  %3005 = vmatprep.subr.mxu1 %v159_v36  ;;  %v74_v46 = vrot.slane %v3439_v45, %v3434_v44  ;;  %v164_v58 = vrot.slane %v3439_v45, %v163_v54  ;;  %v336_v59 = vunpack.c.0.s8 %v335_v56  ;;  %v259_v60 = vrot.slane %v3439_v45, %v3461_v57  ;;  %s3341_s7 = smov 64   ;;  %s3342_s8 = smov 32  }
   0x9   :  { %2996 = vmatprep.subr.mxu0 %v68_v8  ;;  %3006 = vmatpush3.msra.mxu1 %v159_v36  ;;  %vm1028_vm14 = vcmask 1041409   ;;  %vm1657_vm15 = vcmask 523264   ;;  %s3347_s0 = smov 6   ;;  %s3348_s18 = smov 4  }
   0xa   :  { %2997 = vmatpush3.msra.mxu0 %v68_v8  ;;  %3007 = vmatprep.subr.mxu1 %v158_v38  ;;  %v3469_v63 = vsub.s32 %v336_v59, %v3431_v43  ;;  %v1020_v59 = vld [vmem:[%s4084_s1 + $0x78] sm:$0xff]  ;;  %s3349_s19 = smov 7   ;;  %s3350_s20 = smov [#allocation2]  }
   0xb   :  { %3125 = vset.pattern.permute.xlu1 %v3330_v4  ;;  %3126 = vset.pattern.permute.xlu0 %v3330_v4  ;;  %s2877_s21 = sshll.u32 %s3350_s20, 4  ;;  %s2878_s21 = int_to_ptr.vmem [resolvable:$true] %s2877_s21 }
   0xc   :  { %44 = vperm.xlu1 %3125, %v17_v1   ;;  %47 = vperm.xlu0 %3126, %v18_v0   ;;  %s3306_s22 = scalar_lea.vmem %s2878_s21, 32  ;;  %p3311_p1 = scmp.lt.s32.totalorder %s2878_s21, %s2878_s21 }
   0xd   :  { %2998 = vmatprep.subr.mxu0 %v67_v9  ;;  %3008 = vmatpush3.msra.mxu1 %v158_v38  ;;  %p3307_p0 = scmp.ne.s32.totalorder %s2878_s21, %s3306_s22  ;;  %p3312_p2 = scmp.lt.s32.totalorder %s3306_s22, %s3306_s22 }
   0xe   :  { %2999 = vmatpush3.msra.mxu0 %v67_v9  ;;  %3009 = vmatprep.subr.mxu1 %v157_v40 }
   0xf   :  { %3014 = vmatprep.subr.mxu0 %v3332_v11  ;;  %3010 = vmatpush3.msra.mxu1 %v157_v40  ;;  %p3313_p3 = por %p3312_p2, %p3311_p1 }
  0x10   :  { %3127 = vset.pattern.permute.xlu1 %v3331_v7  ;;  %3128 = vset.pattern.permute.xlu0 %v3331_v7 }
  0x11   :  { %56 = vperm.xlu1 %3127, %v17_v1   ;;  %3025 = vmatprep.subr.mxu1 %v3332_v11  ;;  %p3314_p4 = pnand %p3313_p3, %p3307_p0 }
  0x15   :  { %59 = vperm.xlu1 %3127, %v18_v0  }
  0x7d   :  { %v26_v13 = vpop.permute.xlu1 %25  ;;  %v23_v14 = vpop.permute.xlu0 %22 }
  0x7e   :  { %vm27_vm0 = vcmp.eq.s32.totalorder %v20_v15, %v23_v14  ;;  %vm28_vm4 = vcmp.eq.s32.totalorder %v20_v15, %v26_v13 }
  0x7f   :  { %v29_v18 = vsel %vm27_vm0, 1.0, %v3332_v11  ;;  %v30_v27 = vsel %vm28_vm4, 1.0, %v3332_v11  ;;  %vm1793_vm0 = vcmask 254976   ;;  %vm2272_vm4 = vcmask 25624  }
  0x82   :  { %v36_v16 = vpop.permute.xlu1 %35  ;;  %v33_v17 = vpop.permute.xlu0 %32 }
  0x83   :  { %vm37_vm1 = vcmp.eq.s32.totalorder %v20_v15, %v33_v17  ;;  %vm38_vm3 = vcmp.eq.s32.totalorder %v20_v15, %v36_v16 }
  0x84   :  { %v39_v19 = vsel %vm37_vm1, 1.0, %v3332_v11  ;;  %v40_v24 = vsel %vm38_vm3, 1.0, %v3332_v11  ;;  %vm1808_vm1 = vcmask 1024   ;;  %vm2120_vm3 = vcmask 17424  }
  0x85   :  { %v41_v22 = vadd.f32 %v39_v19, %v29_v18  ;;  %v42_v30 = vadd.f32 %v40_v24, %v30_v27 }
  0x87   :  { %v45_v20 = vpop.permute.xlu1 %44  ;;  %v48_v21 = vpop.permute.xlu0 %47 }
  0x88   :  { %vm49_vm2 = vcmp.eq.s32.totalorder %v20_v15, %v45_v20  ;;  %vm50_vm5 = vcmp.eq.s32.totalorder %v20_v15, %v48_v21 }
  0x89   :  { %v51_v23 = vsel %vm49_vm2, 1.0, %v3332_v11  ;;  %v52_v28 = vsel %vm50_vm5, 1.0, %v3332_v11  ;;  %vm1964_vm2 = vcmask 9224   ;;  %vm2430_vm5 = vcmask 33824  }
  0x8a   :  { %v53_v26 = vadd.f32 %v51_v23, %v41_v22  ;;  %v54_v33 = vadd.f32 %v52_v28, %v42_v30 }
  0x8c   :  { %v57_v25 = vpop.permute.xlu1 %56 }
  0x8d   :  { %vm61_vm6 = vcmp.eq.s32.totalorder %v20_v15, %v57_v25 }
  0x8e   :  { %v63_v29 = vsel %vm61_vm6, 1.0, %v3332_v11  ;;  %vm2586_vm6 = vcmask 42024  }
  0x8f   :  { %v65_v31 = vadd.f32 %v63_v29, %v53_v26 }
  0x90   :  { %v60_v32 = vpop.permute.xlu1 %59 }
  0x91   :  { %vm62_vm8 = vcmp.eq.s32.totalorder %v20_v15, %v60_v32  ;;  %3000 = vmatprep.mubr.msk.f32.mxu0 %vm75_vm7, %v65_v31 }
  0x92   :  { %v64_v34 = vsel %vm62_vm8, 1.0, %v3332_v11  ;;  %vm2869_vm8 = vcmask 58424  }
  0x93   :  { %v66_v35 = vadd.f32 %v64_v34, %v54_v33 }
  0x95   :  { %3001 = vmatmul.mubr.msk.f32.vlgmr.msra.gmra.mxu0 %vm75_vm7, %v66_v35 }
  0x96   :  { %3015 = vmatpush3.msra.mxu0 %v255_v37  ;;  %3022 = vmatprep.mubr.msk.f32.mxu0 %vm3333_vm9, %v3332_v11 }
  0x97   :  { %3016 = vmatprep.subr.mxu0 %v3332_v11 }
  0x98   :  { %3017 = vmatpush3.msra.mxu0 %v254_v39 }
  0x99   :  { %3018 = vmatprep.subr.mxu0 %v3332_v11 }
  0x9a   :  { %3019 = vmatpush3.msra.mxu0 %v253_v41 }
  0x9b   :  { %3020 = vmatprep.subr.mxu0 %v3332_v11 }
  0x9c   :  { %3021 = vmatpush3.msra.mxu0 %v252_v42 }
  0x9d   :  { %3035 = vmatprep.subr.mxu0 %v3332_v11 }
 0x155   :  { %v3002_v47 = vpop.f32.mrf.mxu0 }
 0x156   :  { %v3443_v48 = vadd.f32 %v3002_v47, %v74_v46 }
 0x157   :  { %v148_v49 = vpop.f32.mrf.mxu0 }
 0x158   :  { %v3445_v50 = vadd.f32 %v148_v49, %v74_v46  ;;  %v248_v51 = vrot.slane %v3443_v48, 6 }
 0x15a   :  { %v246_v52 = vrot.slane %v3445_v50, 7  ;;  %3011 = vmatprep.mubr.msk.f32.mxu1 %vm75_vm7, %v3445_v50 }
 0x15b   :  { %3012 = vmatmul.mubr.msk.f32.vlgmr.msra.gmra.mxu1 %vm75_vm7, %v3443_v48 }
 0x15c   :  { %v251_v53 = vsel %vm250_vm10, %v246_v52, %v248_v51  ;;  %3027 = vmatprep.mubr.msk.f32.mxu1 %vm3333_vm9, %v3332_v11 }
 0x15d   :  { %3023 = vmatmul.mubr.msk.f32.vlgmr.msra.gmra.mxu0 %vm75_vm7, %v251_v53 }
 0x15e   :  { %3037 = vmatprep.mubr.msk.f32.mxu0 %vm3333_vm9, %v3332_v11 }
 0x21b   :  { %v3013_v61 = vpop.f32.mrf.mxu1 }
 0x21c   :  { %v243_v62 = vadd.f32 %v3013_v61, %v164_v58  ;;  %v1018_v61 = vld [vmem:[%s4084_s1 + $0x68] sm:$0xff] }
 0x21d   :  { %v237_v0 = vpop.f32.mrf.mxu1  ;;  %v329_v1 = vpop.f32.mrf.mxu0 }
 0x21e   :  { %v3471_v2 = vadd.f32 %v237_v0, %v164_v58  ;;  %v330_v3 = vadd.f32 %v329_v1, %v259_v60  ;;  %595 = vrot.lane.b32.xlu0 %v243_v62, %s3335_s14  ;;  %v1019_v60 = vld [vmem:[%s4084_s1 + $0x70] sm:$0xff] }
 0x21f   :  { %v3024_v4 = vpop.f32.mrf.mxu0 }
 0x220   :  { %v340_v5 = vrot.slane %v330_v3, %v3469_v63  ;;  %513 = vrot.lane.b32.xlu1 %v3471_v2, %s3335_s14  ;;  %3026 = vmatpush3.xpose.msk.msra.mxu1 %vm356_vm11, %v3471_v2 }
 0x221   :  { %3030 = vmatprep.subr.mxu1 %v3332_v11 }
 0x222   :  { %v341_v6 = vcombine.high %v340_v5, %v340_v5  ;;  %v348_v7 = vrot.slane %v340_v5, %v3469_v63 }
 0x224   :  { %3028 = vmatmul.mubr.msk.f32.vlgmr.msra.gmra.mxu1 %vm356_vm11, %v348_v7  ;;  %v510_v8 = vrot.slane %v348_v7, %v3434_v44  ;;  %v355_v9 = vrot.slane %v341_v6, %v3469_v63 }
 0x225   :  { %3031 = vmatpush3.xpose.msk.msra.mxu1 %vm356_vm11, %v243_v62  ;;  %3032 = vmatprep.mubr.msk.f32.mxu1 %vm3333_vm9, %v3332_v11 }
 0x226   :  { %511 = vrot.lane.b32.xlu1 %v510_v8, %s3335_s14  ;;  %v592_v10 = vrot.slane %v355_v9, %v3434_v44  ;;  %3040 = vmatprep.subr.mxu1 %v3332_v11 }
 0x228   :  { %593 = vrot.lane.b32.xlu0 %v592_v10, %s3335_s14  ;;  %3033 = vmatmul.mubr.msk.f32.vlgmr.msra.gmra.mxu1 %vm356_vm11, %v355_v9 }
 0x229   :  { %3042 = vmatprep.mubr.msk.f32.mxu1 %vm3333_vm9, %v3332_v11 }
 0x290   :  { %v596_v12 = vpop.permute.xlu0 %595 }
 0x291   :  { %3041 = vmatpush3.xpose.msk.msra.mxu1 %vm356_vm11, %v596_v12 }
 0x292   :  { %v514_v13 = vpop.permute.xlu1 %513  ;;  %3050 = vmatprep.subr.mxu1 %v3332_v11 }
 0x293   :  { %3036 = vmatpush3.xpose.msk.msra.mxu0 %vm356_vm11, %v514_v13 }
 0x294   :  { %3045 = vmatprep.subr.mxu0 %v3332_v11 }
 0x298   :  { %v512_v14 = vpop.permute.xlu1 %511 }
 0x299   :  { %3038 = vmatmul.mubr.msk.f32.vlgmr.msra.gmra.mxu0 %vm356_vm11, %v512_v14 }
 0x29a   :  { %v594_v15 = vpop.permute.xlu0 %593  ;;  %3047 = vmatprep.mubr.msk.f32.mxu0 %vm3333_vm9, %v3332_v11 }
 0x29b   :  { %3043 = vmatmul.mubr.msk.f32.vlgmr.msra.gmra.mxu1 %vm356_vm11, %v594_v15  ;;  %v1023_v15 = vsub.s32 3, %v3431_v43 }
 0x29c   :  { %3052 = vmatprep.mubr.msk.f32.mxu1 %vm3333_vm9, %v3332_v11 }
 0x2e4   :  { %v428_v16 = vpop.f32.mrf.mxu1 }
 0x2e6   :  { %v3029_v17 = vpop.f32.mrf.mxu1 }
 0x2e8   :  { %v503_v18 = vpop.f32.mrf.mxu1 }
 0x2ea   :  { %v3034_v19 = vpop.f32.mrf.mxu1 }
 0x359   :  { %v585_v20 = vpop.f32.mrf.mxu0 }
 0x35a   :  { %v673_v21 = vrot.slane %v585_v20, 7 }
 0x35b   :  { %v3039_v22 = vpop.f32.mrf.mxu0  ;;  %v667_v23 = vpop.f32.mrf.mxu1 }
 0x35c   :  { %v674_v24 = vrot.slane %v667_v23, 7  ;;  %v677_v25 = vsel %vm250_vm10, %v428_v16, %v673_v21  ;;  %v1024_v16 = vrot.slane %v3439_v45, %v1023_v15 }
 0x35d   :  { %v3044_v26 = vpop.f32.mrf.mxu1  ;;  %v680_v27 = vsel %vm679_vm12, %v677_v25, -inf }
 0x35e   :  { %681 = vmax.xlane.f32.xlu1 %v680_v27  ;;  %v678_v28 = vsel %vm250_vm10, %v503_v18, %v674_v24 }
 0x35f   :  { %v683_v29 = vsel %vm679_vm12, %v678_v28, -inf }
 0x360   :  { %684 = vmax.xlane.f32.xlu0 %v683_v29 }
 0x36f   :  { %779 = vrot.lane.b32.xlu1 %v243_v62, %s3336_s15 }
 0x373   :  { %932 = vrot.lane.b32.xlu1 %v243_v62, %s3337_s16  ;;  %v1017_v62 = vld [vmem:[%s4084_s1 + $0x60] sm:$0xff] }
 0x377   :  { %856 = vrot.lane.b32.xlu1 %v3471_v2, %s3337_s16 }
 0x3e7   :  { %v682_v30 = vpop.xlane.xlu1 %681 }
 0x3e8   :  { %v686_v31 = vsub.f32 %v677_v25, %v682_v30 }
 0x3e9   :  { %v685_v32 = vpop.xlane.xlu0 %684 }
 0x3ea   :  { %v688_v33 = vmul.f32 1.442695, %v686_v31  ;;  %v687_v34 = vsub.f32 %v678_v28, %v685_v32 }
 0x3eb   :  { %v780_v35 = vpop.permute.xlu1 %779 }
 0x3ec   :  { %3129 = vpow2.f32 %v688_v33  ;;  %v690_v36 = vmul.f32 1.442695, %v687_v34  ;;  %3051 = vmatpush3.msra.mxu1 %v780_v35 }
 0x3ed   :  { %3060 = vmatprep.subr.mxu1 %v3332_v11 }
 0x3ee   :  { %3131 = vpow2.f32 %v690_v36 }
 0x3ef   :  { %v933_v47 = vpop.permute.xlu1 %932 }
 0x3f3   :  { %v857_v52 = vpop.permute.xlu1 %856 }
 0x3f9   :  { %v3130_v37 = vpop.eup %3129 }
 0x3fa   :  { %v692_v38 = vsel %vm679_vm12, %v3130_v37, 0.0 }
 0x3fb   :  { %v3132_v39 = vpop.eup %3131  ;;  %693 = vadd.xlane.f32.xlu0 %v692_v38 }
 0x3fc   :  { %v695_v40 = vsel %vm679_vm12, %v3132_v39, 0.0 }
 0x3ff   :  { %696 = vadd.xlane.f32.xlu0 %v695_v40  ;;  %v1178_v40 = vld [vmem:[%s4084_s1 + $0x90] sm:$0xff] }
 0x415   :  { %702 = vrot.lane.b32.xlu0 %v3471_v2, %s3336_s15 }
 0x484   :  { %v694_v41 = vpop.xlane.xlu0 %693 }
 0x485   :  { %3133 = vrcp.f32 %v694_v41  ;;  %v1177_v41 = vld [vmem:[%s4084_s1 + $0x88] sm:$0xff] }
 0x488   :  { %v697_v42 = vpop.xlane.xlu0 %696 }
 0x489   :  { %3135 = vrcp.f32 %v697_v42  ;;  %v1176_v42 = vld [vmem:[%s4084_s1 + $0x80] sm:$0xff] }
 0x48c   :  { %v703_v46 = vpop.permute.xlu0 %702 }
 0x48d   :  { %3046 = vmatpush3.msra.mxu0 %v703_v46 }
 0x48e   :  { %3055 = vmatprep.subr.mxu0 %v3332_v11 }
 0x492   :  { %v3134_v49 = vpop.eup %3133 }
 0x493   :  { %v700_v51 = vmul.f32 %v3134_v49, %v3130_v37 }
 0x495   :  { %3048 = vmatmul.mubr.msk.f32.vlgmr.msra.gmra.mxu0 %vm705_vm13, %v700_v51  ;;  %v855_v56 = vrot.slane %v700_v51, 1 }
 0x496   :  { %v3136_v53 = vpop.eup %3135  ;;  %3056 = vmatpush3.msra.mxu0 %v857_v52  ;;  %3057 = vmatprep.mubr.msk.f32.mxu0 %vm3333_vm9, %v3332_v11 }
 0x497   :  { %v701_v55 = vmul.f32 %v3136_v53, %v3132_v39  ;;  %3065 = vmatprep.subr.mxu0 %v3332_v11  ;;  %v1179_v39 = vld [vmem:[%s4084_s1 + $0x98] sm:$0xff] }
 0x499   :  { %3053 = vmatmul.mubr.msk.f32.vlgmr.msra.gmra.mxu1 %vm705_vm13, %v701_v55  ;;  %3058 = vmatmul.mubr.msk.f32.vlgmr.msra.gmra.mxu0 %vm705_vm13, %v855_v56  ;;  %v931_v58 = vrot.slane %v701_v55, 1  ;;  %v1166_v55 = vsub.s32 4, %v3431_v43  ;;  %v1172_v56 = vsub.s32 5, %v3431_v43 }
 0x49a   :  { %3061 = vmatpush3.msra.mxu1 %v933_v47  ;;  %3062 = vmatprep.mubr.msk.f32.mxu1 %vm3333_vm9, %v3332_v11 }
 0x49b   :  { %3073 = vmatprep.mubr.msk.f32.mxu0 %vm3333_vm9, %v3332_v11  ;;  %3066 = vmatpush3.msra.mxu0 %v1020_v59 }
 0x49c   :  { %3067 = vmatprep.subr.mxu0 %v3332_v11  ;;  %3076 = vmatprep.subr.mxu1 %v1179_v39 }
 0x49d   :  { %3063 = vmatmul.mubr.msk.f32.vlgmr.msra.gmra.mxu1 %vm705_vm13, %v931_v58  ;;  %3068 = vmatpush3.msra.mxu0 %v1019_v60  ;;  %v1167_v58 = vrot.slane %v3439_v45, %v1166_v55  ;;  %v16_v55 = vld [vmem:[%s4084_s1 + $0xc8] sm:$0xf] }
 0x49e   :  { %3069 = vmatprep.subr.mxu0 %v3332_v11  ;;  %3077 = vmatpush3.msra.mxu1 %v1179_v39  ;;  %v1467_v39 = vld [vmem:[%s4085_s2 + $0x18] sm:$0xff] }
 0x49f   :  { %3070 = vmatpush3.msra.mxu0 %v1018_v61  ;;  %3078 = vmatprep.subr.mxu1 %v1178_v40  ;;  %v1173_v61 = vrot.slane %v3439_v45, %v1172_v56  ;;  %v3339_v56 = vmov 1983009808  }
 0x4a0   :  { %3071 = vmatprep.subr.mxu0 %v3332_v11  ;;  %3079 = vmatpush3.msra.mxu1 %v1178_v40  ;;  %v1466_v40 = vld [vmem:[%s4085_s2 + $0x10] sm:$0xff] }
 0x4a1   :  { %3072 = vmatpush3.msra.mxu0 %v1017_v62  ;;  %3080 = vmatprep.subr.mxu1 %v1177_v41 }
 0x4a2   :  { %3081 = vmatpush3.msra.mxu1 %v1177_v41  ;;  %v1465_v41 = vld [vmem:[%s4085_s2 + $0x8] sm:$0xff] }
 0x4a3   :  { %3082 = vmatprep.subr.mxu1 %v1176_v42 }
 0x4a4   :  { %3083 = vmatpush3.msra.mxu1 %v1176_v42  ;;  %v1464_v42 = vld [vmem:[%s4085_s2] sm:$0xff] }
 0x555   :  { %v775_v0 = vpop.f32.mrf.mxu0 }
 0x557   :  { %v3049_v1 = vpop.f32.mrf.mxu0 }
 0x559   :  { %v851_v2 = vpop.f32.mrf.mxu1  ;;  %v927_v3 = vpop.f32.mrf.mxu0 }
 0x55a   :  { %1009 = vrot.lane.b32.xlu1 %v927_v3, %s3338_s24 }
 0x55b   :  { %v3054_v4 = vpop.f32.mrf.mxu1  ;;  %v3059_v5 = vpop.f32.mrf.mxu0 }
 0x55c   :  { %v1270_v5 = vld [vmem:[%s4084_s1 + $0xb8] sm:$0xff] }
 0x55d   :  { %v1003_v6 = vpop.f32.mrf.mxu1  ;;  %3087 = vmatprep.subr.mxu0 %v1270_v5 }
 0x55e   :  { %1011 = vrot.lane.b32.xlu0 %v1003_v6, %s3338_s24  ;;  %v1269_v6 = vld [vmem:[%s4084_s1 + $0xb0] sm:$0xff] }
 0x55f   :  { %v3064_v7 = vpop.f32.mrf.mxu1 }
 0x560   :  { %v1268_v7 = vld [vmem:[%s4084_s1 + $0xa8] sm:$0xff] }
 0x5cc   :  { %v1010_v8 = vpop.permute.xlu1 %1009 }
 0x5cd   :  { %v1015_v13 = vsel %vm356_vm11, %v775_v0, %v1010_v8  ;;  %v1267_v8 = vld [vmem:[%s4084_s1 + $0xa0] sm:$0xff] }
 0x5d0   :  { %v1012_v9 = vpop.permute.xlu0 %1011 }
 0x5d1   :  { %v1016_v10 = vsel %vm356_vm11, %v851_v2, %v1012_v9  ;;  %v1182_v9 = vsub.s32 6, %v3431_v43 }
 0x5d2   :  { %v1027_v12 = vrot.slane %v1016_v10, 7 }
 0x5d3   :  { %v1183_v10 = vrot.slane %v3439_v45, %v1182_v9 }
 0x5d4   :  { %v1029_v14 = vsel %vm1028_vm14, %v1027_v12, %v1015_v13 }
 0x5d5   :  { %3074 = vmatmul.mubr.msk.f32.vlgmr.msra.gmra.mxu0 %vm75_vm7, %v1029_v14 }
 0x5d6   :  { %3088 = vmatpush3.msra.mxu0 %v1270_v5 }
 0x5d7   :  { %3089 = vmatprep.subr.mxu0 %v1269_v6 }
 0x5d8   :  { %3090 = vmatpush3.msra.mxu0 %v1269_v6 }
 0x5d9   :  { %3091 = vmatprep.subr.mxu0 %v1268_v7 }
 0x5da   :  { %3092 = vmatpush3.msra.mxu0 %v1268_v7 }
 0x5db   :  { %3093 = vmatprep.subr.mxu0 %v1267_v8 }
 0x5dc   :  { %3094 = vmatpush3.msra.mxu0 %v1267_v8 }
 0x695   :  { %v1098_v17 = vpop.f32.mrf.mxu0 }
 0x696   :  { %v1099_v18 = vadd.f32 %v1098_v17, %v1024_v16 }
 0x697   :  { %v3075_v19 = vpop.f32.mrf.mxu0 }
 0x698   :  { %v1109_v20 = vrot.slane %v1099_v18, %v3469_v63  ;;  %v1273_v19 = vsub.s32 7, %v3431_v43 }
 0x69a   :  { %v1110_v21 = vcombine.high %v1109_v20, %v1109_v20  ;;  %v1117_v22 = vrot.slane %v1109_v20, %v3469_v63  ;;  %v1274_v20 = vrot.slane %v3439_v45, %v1273_v19 }
 0x69c   :  { %v1128_v23 = vrot.slane %v1117_v22, %v3434_v44  ;;  %v1124_v24 = vrot.slane %v1110_v21, %v3469_v63 }
 0x69e   :  { %v1135_v25 = vadd.f32 %v1128_v23, %v3445_v50  ;;  %v1132_v26 = vrot.slane %v1124_v24, %v3434_v44 }
 0x6a0   :  { %v1137_v27 = vsel %vm75_vm7, %v1135_v25, 0.0  ;;  %v1136_v28 = vadd.f32 %v1132_v26, %v3443_v48 }
 0x6a1   :  { %1138 = vadd.xlane.f32.xlu0 %v1137_v27 }
 0x6a2   :  { %v1140_v29 = vsel %vm75_vm7, %v1136_v28, 0.0 }
 0x6a3   :  { %1141 = vadd.xlane.f32.xlu1 %v1140_v29 }
 0x72a   :  { %v1139_v30 = vpop.xlane.xlu0 %1138 }
 0x72b   :  { %v1144_v31 = vmul.f32 0.03125, %v1139_v30 }
 0x72c   :  { %v1142_v32 = vpop.xlane.xlu1 %1141 }
 0x72d   :  { %v1146_v33 = vsub.f32 %v1135_v25, %v1144_v31  ;;  %v1145_v34 = vmul.f32 0.03125, %v1142_v32 }
 0x72f   :  { %v1147_v35 = vsub.f32 %v1136_v28, %v1145_v34  ;;  %v1148_v36 = vmul.f32 %v1146_v33, %v1146_v33 }
 0x731   :  { %v1150_v63 = vsel %vm75_vm7, %v1148_v36, 0.0  ;;  %v1149_v37 = vmul.f32 %v1147_v35, %v1147_v35 }
 0x732   :  { %1151 = vadd.xlane.f32.xlu0 %v1150_v63  ;;  %v1470_v63 = vld [vmem:[%s4085_s2 + $0x30] sm:$0xff] }
 0x733   :  { %v1153_v38 = vsel %vm75_vm7, %v1149_v37, 0.0  ;;  %v1469_v37 = vld [vmem:[%s4085_s2 + $0x28] sm:$0xff] }
 0x736   :  { %1154 = vadd.xlane.f32.xlu0 %v1153_v38  ;;  %v1468_v38 = vld [vmem:[%s4085_s2 + $0x20] sm:$0xff] }
 0x7bb   :  { %v1152_v46 = vpop.xlane.xlu0 %1151 }
 0x7bc   :  { %v1156_v47 = vmul.f32 0.03125, %v1152_v46 }
 0x7be   :  { %v1158_v49 = vadd.f32 1e-05, %v1156_v47 }
 0x7bf   :  { %v1155_v51 = vpop.xlane.xlu0 %1154 }
 0x7c0   :  { %3137 = vrsqrt.f32 %v1158_v49  ;;  %v1157_v52 = vmul.f32 0.03125, %v1155_v51 }
 0x7c2   :  { %v1159_v53 = vadd.f32 1e-05, %v1157_v52 }
 0x7c4   :  { %3139 = vrsqrt.f32 %v1159_v53 }
 0x7cd   :  { %v3138_v59 = vpop.eup %3137 }
 0x7ce   :  { %v1162_v60 = vmul.f32 %v3138_v59, %v1146_v33  ;;  %v1387_v59 = vrot.slane %v16_v55, %v3434_v44 }
 0x7d0   :  { %v1168_v62 = vmul.f32 %v1167_v58, %v1162_v60 }
 0x7d1   :  { %v3140_v0 = vpop.eup %3139 }
 0x7d2   :  { %v1163_v1 = vmul.f32 %v3140_v0, %v1147_v35  ;;  %v1174_v2 = vadd.f32 %v1173_v61, %v1168_v62 }
 0x7d4   :  { %v1169_v3 = vmul.f32 %v1167_v58, %v1163_v1  ;;  %3084 = vmatprep.mubr.msk.f32.mxu1 %vm75_vm7, %v1174_v2  ;;  %v1398_v58 = vunpack.c.l.s4 %v3339_v56  ;;  %v3340_v1 = vmov 1934713408  }
 0x7d5   :  { %v1429_v2 = vunpack.c.l.s4 %v3340_v1  ;;  %v3680_v1 = vld [vmem:[%s4085_s2 + $0xa0] sm:$0xff] }
 0x7d6   :  { %v1175_v4 = vadd.f32 %v1173_v61, %v1169_v3  ;;  %v1393_v61 = vrot.slane %v16_v55, %v3461_v57  ;;  %v1399_v62 = vunpack.c.0.s8 %v1398_v58 }
 0x7d7   :  { %v1430_v9 = vunpack.c.0.s8 %v1429_v2  ;;  %v3687_v2 = vld [vmem:[%s4085_s2 + $0x98] sm:$0xff] }
 0x7d8   :  { %3085 = vmatmul.mubr.msk.f32.vlgmr.msra.gmra.mxu1 %vm75_vm7, %v1175_v4  ;;  %v1402_v6 = vsub.s32 %v1399_v62, %v3431_v43  ;;  %v3669_v62 = vld [vmem:[%s4085_s2 + $0xb0] sm:$0xff] }
 0x7d9   :  { %1593 = vmatprep.mubr.f32.mxu1 %v3332_v11 }
 0x898   :  { %v3086_v12 = vpop.f32.mrf.mxu1 }
 0x899   :  { %v1262_v13 = vadd.f32 %v3086_v12, %v1183_v10 }
 0x89a   :  { %v1256_v14 = vpop.f32.mrf.mxu1 }
 0x89b   :  { %v1257_v16 = vadd.f32 %v1256_v14, %v1183_v10  ;;  %v1266_v18 = vmax.f32 %v1262_v13, 0.0 }
 0x89d   :  { %v1265_v17 = vmax.f32 %v1257_v16, 0.0  ;;  %v1433_v16 = vsub.s32 %v1430_v9, %v3431_v43  ;;  %v3736_v9 = vld [vmem:[%s4085_s2 + $0x60] sm:$0xff] }
 0x89f   :  { %3095 = vmatprep.mubr.msk.f32.mxu0 %vm75_vm7, %v1265_v17 }
 0x8a0   :  { %3096 = vmatmul.mubr.msk.f32.vlgmr.msra.gmra.mxu0 %vm75_vm7, %v1266_v18 }
 0x8a1   :  { %1725 = vmatprep.mubr.f32.mxu0 %v3332_v11 }
 0x960   :  { %v3097_v21 = vpop.f32.mrf.mxu0 }
 0x961   :  { %v1353_v22 = vadd.f32 %v3097_v21, %v1274_v20 }
 0x962   :  { %v1347_v23 = vpop.f32.mrf.mxu0 }
 0x963   :  { %v1348_v24 = vadd.f32 %v1347_v23, %v1274_v20  ;;  %v1357_v25 = vadd.f32 %v1353_v22, %v3443_v48 }
 0x965   :  { %v1361_v26 = vsel %vm75_vm7, %v1357_v25, 0.0  ;;  %v1356_v27 = vadd.f32 %v1348_v24, %v3445_v50  ;;  %v1471_v50 = vld [vmem:[%s4085_s2 + $0x38] sm:$0xff] }
 0x966   :  { %1362 = vadd.xlane.f32.xlu0 %v1361_v26  ;;  %1553 = vmatprep.subr.mxu1 %v1471_v50 }
 0x967   :  { %v1358_v28 = vsel %vm75_vm7, %v1356_v27, 0.0  ;;  %1554 = vmatpush1.msra.mxu1 %v1470_v63 }
 0x968   :  { %1359 = vadd.xlane.f32.xlu1 %v1358_v28  ;;  %1555 = vmatprep.subr.mxu1 %v1469_v37 }
 0x969   :  { %1556 = vmatpush1.msra.mxu1 %v1468_v38  ;;  %v3644_v38 = vld [vmem:[%s4085_s2 + $0xc0] ss:$8 sm:$0x3] }
 0x96a   :  { %1557 = vmatprep.subr.mxu1 %v1467_v39  ;;  %v1476_v39 = vrot.slane %v3644_v38, %v3434_v44 }
 0x96b   :  { %1558 = vmatpush1.msra.mxu1 %v1466_v40 }
 0x96c   :  { %1559 = vmatprep.subr.mxu1 %v1465_v41 }
 0x96d   :  { %1560 = vmatpush1.msra.mxu1 %v1464_v42 }
 0x9ef   :  { %v1363_v29 = vpop.xlane.xlu0 %1362 }
 0x9f0   :  { %v1365_v30 = vmul.f32 0.03125, %v1363_v29 }
 0x9f1   :  { %v1360_v31 = vpop.xlane.xlu1 %1359 }
 0x9f2   :  { %v1367_v32 = vsub.f32 %v1357_v25, %v1365_v30  ;;  %v1364_v33 = vmul.f32 0.03125, %v1360_v31 }
 0x9f4   :  { %v1366_v45 = vsub.f32 %v1356_v27, %v1364_v33  ;;  %v1369_v34 = vmul.f32 %v1367_v32, %v1367_v32 }
 0x9f6   :  { %v1373_v35 = vsel %vm75_vm7, %v1369_v34, 0.0  ;;  %v1368_v36 = vmul.f32 %v1366_v45, %v1366_v45 }
 0x9f7   :  { %1374 = vadd.xlane.f32.xlu0 %v1373_v35 }
 0x9f8   :  { %v1370_v48 = vsel %vm75_vm7, %v1368_v36, 0.0 }
 0x9f9   :  { %1371 = vadd.xlane.f32.xlu1 %v1370_v48 }
 0xa80   :  { %v1375_v46 = vpop.xlane.xlu0 %1374 }
 0xa81   :  { %v1377_v47 = vmul.f32 0.03125, %v1375_v46 }
 0xa82   :  { %v1372_v49 = vpop.xlane.xlu1 %1371 }
 0xa83   :  { %v1379_v51 = vadd.f32 1e-05, %v1377_v47  ;;  %v1376_v52 = vmul.f32 0.03125, %v1372_v49 }
 0xa85   :  { %3141 = vrsqrt.f32 %v1379_v51  ;;  %v1378_v53 = vadd.f32 1e-05, %v1376_v52 }
 0xa87   :  { %3143 = vrsqrt.f32 %v1378_v53 }
 0xa92   :  { %v3142_v60 = vpop.eup %3141 }
 0xa93   :  { %v1383_v0 = vmul.f32 %v3142_v60, %v1367_v32 }
 0xa94   :  { %v3144_v3 = vpop.eup %3143 }
 0xa95   :  { %v1389_v4 = vmul.f32 %v1387_v59, %v1383_v0  ;;  %v1382_v5 = vmul.f32 %v3144_v3, %v1366_v45  ;;  %v3674_v0 = vld [vmem:[%s4085_s2 + $0xa8] sm:$0xff]  ;;  %v3694_v3 = vld [vmem:[%s4085_s2 + $0x90] sm:$0xff] }
 0xa97   :  { %v1395_v7 = vadd.f32 %v1393_v61, %v1389_v4  ;;  %v1388_v8 = vmul.f32 %v1387_v59, %v1382_v5  ;;  %v3701_v4 = vld [vmem:[%s4085_s2 + $0x88] sm:$0xff]  ;;  %v3708_v5 = vld [vmem:[%s4085_s2 + $0x80] sm:$0xff] }
 0xa99   :  { %v1394_v10 = vadd.f32 %v1393_v61, %v1388_v8  ;;  %v1411_v12 = vcombine.high %v1395_v7, %v3332_v11  ;;  %v1418_v13 = vrot.slane %v1395_v7, %v1402_v6  ;;  %v3664_v61 = vld [vmem:[%s4085_s2 + $0xb8] sm:$0xff]  ;;  %v3722_v7 = vld [vmem:[%s4085_s2 + $0x70] sm:$0xff]  ;;  %v3729_v8 = vld [vmem:[%s4085_s2 + $0x68] sm:$0xff] }
 0xa9a   :  { %1677 = vmatprep.subr.mxu0 %v3664_v61  ;;  %1842 = vmatprep.subr.mxu1 %v3664_v61 }
 0xa9b   :  { %v1403_v14 = vrot.slane %v1394_v10, %v1402_v6  ;;  %v1396_v17 = vcombine.high %v1394_v10, %v3332_v11  ;;  %v1425_v21 = vrot.slane %v1411_v12, %v1402_v6  ;;  %1678 = vmatpush1.msra.mxu0 %v3669_v62  ;;  %v3743_v12 = vld [vmem:[%s4085_s2 + $0x58] sm:$0xff] }
 0xa9c   :  { %1679 = vmatprep.subr.mxu0 %v3674_v0 }
 0xa9d   :  { %v1426_v18 = vcombine.low %v1403_v14, %v1418_v13  ;;  %v1427_v19 = vcombine.high %v1403_v14, %v1418_v13  ;;  %v1410_v20 = vrot.slane %v1396_v17, %v1402_v6  ;;  %1680 = vmatpush1.msra.mxu0 %v3680_v1  ;;  %v3751_v13 = vld [vmem:[%s4085_s2 + $0x50] sm:$0xff]  ;;  %v3757_v14 = vld [vmem:[%s4085_s2 + $0x48] sm:$0xff] }
 0xa9e   :  { %1681 = vmatprep.subr.mxu0 %v3687_v2 }
 0xa9f   :  { %v1434_v22 = vrot.slane %v1426_v18, %v1433_v16  ;;  %v1441_v23 = vrot.slane %v1427_v19, %v1433_v16  ;;  %v1442_v24 = vcombine.low %v1410_v20, %v1425_v21  ;;  %v1443_v25 = vcombine.high %v1410_v20, %v1425_v21  ;;  %1682 = vmatpush1.msra.mxu0 %v3694_v3 }
 0xaa0   :  { %1683 = vmatprep.subr.mxu0 %v3701_v4  ;;  %v3798_v21 = vrot.slane %v3644_v38, %v3461_v57 }
 0xaa1   :  { %v1458_v26 = vcombine.high %v1434_v22, %v3332_v11  ;;  %v1459_v27 = vcombine.high %v1441_v23, %v3332_v11  ;;  %v1450_v28 = vrot.slane %v1442_v24, %v1433_v16  ;;  %v1457_v29 = vrot.slane %v1443_v25, %v1433_v16  ;;  %1684 = vmatpush1.msra.mxu0 %v3708_v5  ;;  %v3770_v16 = vld [vmem:[%s4085_s2 + $0x40] sm:$0xff] }
 0xaa3   :  { %v1491_v30 = vcombine.low %v1434_v22, %v1458_v26  ;;  %v1492_v31 = vcombine.low %v1441_v23, %v1459_v27  ;;  %v1460_v32 = vcombine.high %v1450_v28, %v3332_v11  ;;  %v1461_v33 = vcombine.high %v1457_v29, %v3332_v11 }
 0xaa5   :  { %v1499_v45 = vrot.slane %v1491_v30, %v1402_v6  ;;  %v1506_v34 = vrot.slane %v1492_v31, %v1402_v6  ;;  %v1508_v35 = vcombine.low %v1450_v28, %v1460_v32  ;;  %v1509_v36 = vcombine.low %v1457_v29, %v1461_v33 }
 0xaa7   :  { %v1507_v48 = vcombine.low %v1499_v45, %v1506_v34  ;;  %v1516_v50 = vrot.slane %v1508_v35, %v1402_v6  ;;  %v1523_v63 = vrot.slane %v1509_v36, %v1402_v6  ;;  %v3715_v6 = vld [vmem:[%s4085_s2 + $0x78] sm:$0xff] }
 0xaa8   :  { %1685 = vmatprep.subr.mxu0 %v3715_v6 }
 0xaa9   :  { %2908 = vmatmul.mubr.msk.f32.vlgmr.msra.gmra.mxu1 %vm75_vm7, %v1507_v48  ;;  %v1524_v37 = vcombine.low %v1516_v50, %v1523_v63  ;;  %1686 = vmatpush1.msra.mxu0 %v3722_v7 }
 0xaaa   :  { %1599 = vmatprep.mubr.f32.mxu1 %v3332_v11  ;;  %1843 = vmatpush1.msra.mxu1 %v3669_v62 }
 0xaab   :  { %1844 = vmatprep.subr.mxu1 %v3674_v0  ;;  %1687 = vmatprep.subr.mxu0 %v3729_v8 }
 0xaac   :  { %1845 = vmatpush1.msra.mxu1 %v3680_v1  ;;  %1688 = vmatpush1.msra.mxu0 %v3736_v9 }
 0xaad   :  { %2909 = vmatmul.mubr.msk.f32.gmra.mxu1 %vm75_vm7, %v1524_v37  ;;  %1846 = vmatprep.subr.mxu1 %v3687_v2 }
 0xaae   :  { %1890 = vmatprep.mubr.f32.mxu1 %v3332_v11  ;;  %1847 = vmatpush1.msra.mxu1 %v3694_v3 }
 0xaaf   :  { %1848 = vmatprep.subr.mxu1 %v3701_v4  ;;  %1689 = vmatprep.subr.mxu0 %v3743_v12 }
 0xab0   :  { %1849 = vmatpush1.msra.mxu1 %v3708_v5  ;;  %1690 = vmatpush1.msra.mxu0 %v3751_v13 }
 0xab1   :  { %1850 = vmatprep.subr.mxu1 %v3715_v6  ;;  %1691 = vmatprep.subr.mxu0 %v3757_v14 }
 0xab2   :  { %1851 = vmatpush1.msra.mxu1 %v3722_v7  ;;  %1692 = vmatpush1.msra.mxu0 %v3770_v16 }
 0xab3   :  { %1852 = vmatprep.subr.mxu1 %v3729_v8  ;;  %1998 = vmatprep.subr.mxu0 %v3664_v61 }
 0xab4   :  { %1853 = vmatpush1.msra.mxu1 %v3736_v9 }
 0xab5   :  { %1854 = vmatprep.subr.mxu1 %v3743_v12 }
 0xab6   :  { %1855 = vmatpush1.msra.mxu1 %v3751_v13 }
 0xab7   :  { %1856 = vmatprep.subr.mxu1 %v3757_v14 }
 0xab8   :  { %1857 = vmatpush1.msra.mxu1 %v3770_v16 }
 0xab9   :  { %2150 = vmatprep.subr.mxu1 %v3664_v61 }
 0xb69   :  { %v1595_v40 = vpop.f32.mrf.mxu1 }
 0xb6a   :  { %v3648_v41 = vadd.f32 %v1595_v40, %v1476_v39 }
 0xb6b   :  { %v3650_v42 = vpop.f32.mrf.mxu1 }
 0xb6c   :  { %3145 = vtanh.f32 %v3648_v41  ;;  %v2910_v51 = vmul.f32 -1.442695, %v3648_v41  ;;  %v3802_v22 = vadd.f32 %v3650_v42, %v3798_v21  ;;  %v1653_v23 = vrot.slane %v3648_v41, 2 }
 0xb6d   :  { %v1601_v46 = vpop.f32.mrf.mxu1 }
 0xb6e   :  { %v3653_v47 = vadd.f32 %v1601_v46, %v1476_v39  ;;  %3147 = vpow2.f32 %v2910_v51  ;;  %v1654_v26 = vrot.slane %v3802_v22, 2 }
 0xb79   :  { %v3146_v49 = vpop.eup %3145 }
 0xb7a   :  { %1631 = vrot.lane.b32.xlu1 %v3146_v49, %s3341_s7 }
 0xb7b   :  { %v3148_v52 = vpop.eup %3147 }
 0xb7c   :  { %v1625_v53 = vadd.f32 1.0, %v3148_v52 }
 0xb7e   :  { %3149 = vrcp.f32 %v1625_v53 }
 0xb8b   :  { %v3150_v44 = vpop.eup %3149 }
 0xb8c   :  { %v1629_v58 = vmul.f32 0.0, %v3150_v44 }
 0xbec   :  { %v1632_v55 = vpop.permute.xlu1 %1631 }
 0xbed   :  { %v1634_v56 = vmul.f32 %v3150_v44, %v1632_v55 }
 0xbef   :  { %1636 = vrot.lane.b32.xlu0 %v1634_v56, %s3342_s8 }
 0xc61   :  { %v1637_v59 = vpop.permute.xlu0 %1636 }
 0xc62   :  { %v3658_v60 = vadd.f32 %v1637_v59, %v1629_v58 }
 0xc64   :  { %3151 = vtanh.f32 %v3658_v60 }
 0xc71   :  { %v3152_v10 = vpop.eup %3151 }
 0xc72   :  { %1642 = vrot.lane.b32.xlu1 %v3152_v10, %s3341_s7  ;;  %v3843_v10 = vpop.f32.mrf.mxu1 }
 0xce4   :  { %v1643_v17 = vpop.permute.xlu1 %1642 }
 0xce5   :  { %v1645_v18 = vmul.f32 %v3150_v44, %v1643_v17  ;;  %v1819_v17 = vrot.slane %v3648_v41, 4 }
 0xce7   :  { %1647 = vrot.lane.b32.xlu1 %v1645_v18, %s3342_s8 }
 0xd59   :  { %v1648_v19 = vpop.permute.xlu1 %1647 }
 0xd5a   :  { %v1650_v20 = vsel %vm75_vm7, %v1648_v19, 0.0 }
 0xd5b   :  { %2911 = vmatmul.mubr.msk.f32.vlgmr.msra.gmra.mxu0 %vm1657_vm15, %v1650_v20  ;;  %v1820_v20 = vrot.slane %v3802_v22, 4 }
 0xd5c   :  { %1999 = vmatpush1.msra.mxu0 %v3669_v62  ;;  %2046 = vmatprep.mubr.f32.mxu0 %v3332_v11 }
 0xd5d   :  { %2000 = vmatprep.subr.mxu0 %v3674_v0 }
 0xd5e   :  { %2001 = vmatpush1.msra.mxu0 %v3680_v1 }
 0xd5f   :  { %2002 = vmatprep.subr.mxu0 %v3687_v2 }
 0xd60   :  { %2003 = vmatpush1.msra.mxu0 %v3694_v3 }
 0xd61   :  { %2004 = vmatprep.subr.mxu0 %v3701_v4 }
 0xd62   :  { %2005 = vmatpush1.msra.mxu0 %v3708_v5 }
 0xd63   :  { %2006 = vmatprep.subr.mxu0 %v3715_v6 }
 0xd64   :  { %2007 = vmatpush1.msra.mxu0 %v3722_v7 }
 0xd65   :  { %2008 = vmatprep.subr.mxu0 %v3729_v8 }
 0xd66   :  { %2009 = vmatpush1.msra.mxu0 %v3736_v9 }
 0xd67   :  { %2010 = vmatprep.subr.mxu0 %v3743_v12 }
 0xd68   :  { %2011 = vmatpush1.msra.mxu0 %v3751_v13 }
 0xd69   :  { %2012 = vmatprep.subr.mxu0 %v3757_v14 }
 0xd6a   :  { %2013 = vmatpush1.msra.mxu0 %v3770_v16 }
 0xd6b   :  { %2308 = vmatprep.subr.mxu0 %v3664_v61 }
 0xe1b   :  { %v1727_v24 = vpop.f32.mrf.mxu0 }
 0xe1c   :  { %v1728_v25 = vadd.f32 %v1727_v24, %v1653_v23 }
 0xe1d   :  { %v1729_v27 = vpop.f32.mrf.mxu0 }
 0xe1e   :  { %3153 = vtanh.f32 %v1728_v25  ;;  %v1730_v28 = vadd.f32 %v1729_v27, %v1654_v26  ;;  %v2912_v57 = vmul.f32 -1.442695, %v1728_v25 }
 0xe20   :  { %3155 = vtanh.f32 %v1730_v28  ;;  %v2913_v31 = vmul.f32 -1.442695, %v1730_v28 }
 0xe21   :  { %3157 = vpow2.f32 %v2912_v57 }
 0xe22   :  { %3159 = vpow2.f32 %v2913_v31 }
 0xe2b   :  { %v3154_v29 = vpop.eup %3153 }
 0xe2c   :  { %1748 = vrot.lane.b32.xlu0 %v3154_v29, %s3341_s7 }
 0xe2d   :  { %v3156_v30 = vpop.eup %3155 }
 0xe2e   :  { %1765 = vrot.lane.b32.xlu1 %v3156_v30, %s3341_s7  ;;  %v3158_v32 = vpop.eup %3157 }
 0xe2f   :  { %v3160_v33 = vpop.eup %3159  ;;  %v1738_v45 = vadd.f32 1.0, %v3158_v32 }
 0xe30   :  { %v1739_v34 = vadd.f32 1.0, %v3160_v33 }
 0xe31   :  { %3161 = vrcp.f32 %v1738_v45 }
 0xe32   :  { %3163 = vrcp.f32 %v1739_v34 }
 0xe3e   :  { %v3162_v35 = vpop.eup %3161 }
 0xe3f   :  { %v3164_v50 = vpop.eup %3163  ;;  %v1746_v38 = vmul.f32 %v3162_v35, %v3658_v60 }
 0xe40   :  { %v1763_v42 = vmul.f32 0.0, %v3164_v50 }
 0xe9e   :  { %v1749_v36 = vpop.permute.xlu0 %1748 }
 0xe9f   :  { %v1751_v48 = vmul.f32 %v3162_v35, %v1749_v36 }
 0xea0   :  { %v1766_v63 = vpop.permute.xlu1 %1765 }
 0xea1   :  { %1753 = vrot.lane.b32.xlu0 %v1751_v48, %s3342_s8  ;;  %v1768_v37 = vmul.f32 %v3164_v50, %v1766_v63 }
 0xea3   :  { %1770 = vrot.lane.b32.xlu1 %v1768_v37, %s3342_s8 }
 0xf13   :  { %v1754_v39 = vpop.permute.xlu0 %1753 }
 0xf14   :  { %v3811_v40 = vadd.f32 %v1754_v39, %v1746_v38 }
 0xf15   :  { %v1771_v46 = vpop.permute.xlu1 %1770 }
 0xf16   :  { %3165 = vtanh.f32 %v3811_v40  ;;  %v3814_v49 = vadd.f32 %v1771_v46, %v1763_v42 }
 0xf18   :  { %3167 = vtanh.f32 %v3814_v49 }
 0xf23   :  { %v3166_v51 = vpop.eup %3165 }
 0xf24   :  { %1759 = vrot.lane.b32.xlu0 %v3166_v51, %s3341_s7 }
 0xf25   :  { %v3168_v52 = vpop.eup %3167 }
 0xf26   :  { %1776 = vrot.lane.b32.xlu1 %v3168_v52, %s3341_s7 }
 0xf96   :  { %v1760_v53 = vpop.permute.xlu0 %1759 }
 0xf97   :  { %v1762_v44 = vmul.f32 %v3162_v35, %v1760_v53 }
 0xf98   :  { %v1777_v55 = vpop.permute.xlu1 %1776 }
 0xf99   :  { %1811 = vrot.lane.b32.xlu0 %v1762_v44, %s3342_s8  ;;  %v3820_v56 = vmul.f32 %v3164_v50, %v1777_v55 }
 0xf9b   :  { %1815 = vrot.lane.b32.xlu1 %v3820_v56, %s3341_s7 }
0x100b   :  { %v1812_v58 = vpop.permute.xlu0 %1811 }
0x100d   :  { %v1816_v59 = vpop.permute.xlu1 %1815 }
0x100e   :  { %v1818_v60 = vsel %vm75_vm7, %v1812_v58, %v1816_v59  ;;  %v1975_v58 = vrot.slane %v3648_v41, 6 }
0x100f   :  { %2915 = vmatmul.mubr.msk.f32.vlgmr.msra.gmra.mxu1 %vm1657_vm15, %v1818_v60 }
0x1010   :  { %2151 = vmatpush1.msra.mxu1 %v3669_v62  ;;  %2198 = vmatprep.mubr.f32.mxu1 %v3332_v11 }
0x1011   :  { %2152 = vmatprep.subr.mxu1 %v3674_v0 }
0x1012   :  { %2153 = vmatpush1.msra.mxu1 %v3680_v1 }
0x1013   :  { %2154 = vmatprep.subr.mxu1 %v3687_v2 }
0x1014   :  { %2155 = vmatpush1.msra.mxu1 %v3694_v3 }
0x1015   :  { %2156 = vmatprep.subr.mxu1 %v3701_v4 }
0x1016   :  { %2157 = vmatpush1.msra.mxu1 %v3708_v5 }
0x1017   :  { %2158 = vmatprep.subr.mxu1 %v3715_v6 }
0x1018   :  { %2159 = vmatpush1.msra.mxu1 %v3722_v7 }
0x1019   :  { %2160 = vmatprep.subr.mxu1 %v3729_v8 }
0x101a   :  { %2161 = vmatpush1.msra.mxu1 %v3736_v9 }
0x101b   :  { %2162 = vmatprep.subr.mxu1 %v3743_v12 }
0x101c   :  { %2163 = vmatpush1.msra.mxu1 %v3751_v13 }
0x101d   :  { %2164 = vmatprep.subr.mxu1 %v3757_v14 }
0x101e   :  { %2165 = vmatpush1.msra.mxu1 %v3770_v16 }
0x101f   :  { %2464 = vmatprep.subr.mxu1 %v3664_v61 }
0x10cf   :  { %v1892_v18 = vpop.f32.mrf.mxu1 }
0x10d0   :  { %v1893_v19 = vadd.f32 %v1892_v18, %v1819_v17  ;;  %v1976_v17 = vrot.slane %v3802_v22, 6 }
0x10d1   :  { %v1894_v23 = vpop.f32.mrf.mxu1 }
0x10d2   :  { %3169 = vtanh.f32 %v1893_v19  ;;  %v1895_v24 = vadd.f32 %v1894_v23, %v1820_v20  ;;  %v2916_v27 = vmul.f32 -1.442695, %v1893_v19 }
0x10d4   :  { %3171 = vtanh.f32 %v1895_v24  ;;  %v2917_v28 = vmul.f32 -1.442695, %v1895_v24 }
0x10d5   :  { %3173 = vpow2.f32 %v2916_v27 }
0x10d6   :  { %3175 = vpow2.f32 %v2917_v28 }
0x10df   :  { %v3170_v25 = vpop.eup %3169 }
0x10e0   :  { %1913 = vrot.lane.b32.xlu0 %v3170_v25, %s3341_s7 }
0x10e1   :  { %v3172_v26 = vpop.eup %3171 }
0x10e2   :  { %1930 = vrot.lane.b32.xlu1 %v3172_v26, %s3341_s7  ;;  %v3174_v29 = vpop.eup %3173 }
0x10e3   :  { %v3176_v30 = vpop.eup %3175  ;;  %v1903_v57 = vadd.f32 1.0, %v3174_v29 }
0x10e4   :  { %v1904_v31 = vadd.f32 1.0, %v3176_v30 }
0x10e5   :  { %3177 = vrcp.f32 %v1903_v57 }
0x10e6   :  { %3179 = vrcp.f32 %v1904_v31 }
0x10f2   :  { %v3178_v32 = vpop.eup %3177 }
0x10f3   :  { %v3180_v34 = vpop.eup %3179  ;;  %v1911_v48 = vmul.f32 %v3178_v32, %v3811_v40 }
0x10f4   :  { %v1928_v37 = vmul.f32 %v3180_v34, %v3814_v49 }
0x1152   :  { %v1914_v33 = vpop.permute.xlu0 %1913 }
0x1153   :  { %v1916_v45 = vmul.f32 %v3178_v32, %v1914_v33 }
0x1154   :  { %v1931_v35 = vpop.permute.xlu1 %1930 }
0x1155   :  { %1918 = vrot.lane.b32.xlu0 %v1916_v45, %s3342_s8  ;;  %v1933_v36 = vmul.f32 %v3180_v34, %v1931_v35 }
0x1157   :  { %1935 = vrot.lane.b32.xlu1 %v1933_v36, %s3342_s8 }
0x11c7   :  { %v1919_v50 = vpop.permute.xlu0 %1918 }
0x11c8   :  { %v3852_v63 = vadd.f32 %v1919_v50, %v1911_v48 }
0x11c9   :  { %v1936_v38 = vpop.permute.xlu1 %1935 }
0x11ca   :  { %3181 = vtanh.f32 %v3852_v63  ;;  %v3856_v39 = vadd.f32 %v1936_v38, %v1928_v37 }
0x11cc   :  { %3183 = vtanh.f32 %v3856_v39 }
0x11d7   :  { %v3182_v42 = vpop.eup %3181 }
0x11d8   :  { %1924 = vrot.lane.b32.xlu0 %v3182_v42, %s3341_s7 }
0x11d9   :  { %v3184_v46 = vpop.eup %3183 }
0x11da   :  { %1941 = vrot.lane.b32.xlu1 %v3184_v46, %s3341_s7 }
0x124a   :  { %v1925_v51 = vpop.permute.xlu0 %1924 }
0x124b   :  { %v1927_v40 = vmul.f32 %v3178_v32, %v1925_v51 }
0x124c   :  { %v1942_v52 = vpop.permute.xlu1 %1941 }
0x124d   :  { %1967 = vrot.lane.b32.xlu0 %v1927_v40, %s3342_s8  ;;  %v3862_v53 = vmul.f32 %v3180_v34, %v1942_v52 }
0x124f   :  { %1971 = vrot.lane.b32.xlu1 %v3862_v53, %s3341_s7 }
0x12bf   :  { %v1968_v49 = vpop.permute.xlu0 %1967 }
0x12c1   :  { %v1972_v44 = vpop.permute.xlu1 %1971 }
0x12c2   :  { %v1974_v55 = vsel %vm75_vm7, %v1968_v49, %v1972_v44  ;;  %v3927_v49 = vadd.f32 %v3843_v10, %v3798_v21 }
0x12c3   :  { %2919 = vmatmul.mubr.msk.f32.vlgmr.msra.gmra.mxu0 %vm1657_vm15, %v1974_v55 }
0x12c4   :  { %2309 = vmatpush1.msra.mxu0 %v3669_v62  ;;  %2356 = vmatprep.mubr.f32.mxu0 %v3332_v11 }
0x12c5   :  { %2310 = vmatprep.subr.mxu0 %v3674_v0 }
0x12c6   :  { %2311 = vmatpush1.msra.mxu0 %v3680_v1 }
0x12c7   :  { %2312 = vmatprep.subr.mxu0 %v3687_v2 }
0x12c8   :  { %2313 = vmatpush1.msra.mxu0 %v3694_v3 }
0x12c9   :  { %2314 = vmatprep.subr.mxu0 %v3701_v4 }
0x12ca   :  { %2315 = vmatpush1.msra.mxu0 %v3708_v5 }
0x12cb   :  { %2316 = vmatprep.subr.mxu0 %v3715_v6 }
0x12cc   :  { %2317 = vmatpush1.msra.mxu0 %v3722_v7 }
0x12cd   :  { %2318 = vmatprep.subr.mxu0 %v3729_v8 }
0x12ce   :  { %2319 = vmatpush1.msra.mxu0 %v3736_v9 }
0x12cf   :  { %2320 = vmatprep.subr.mxu0 %v3743_v12 }
0x12d0   :  { %2321 = vmatpush1.msra.mxu0 %v3751_v13 }
0x12d1   :  { %2322 = vmatprep.subr.mxu0 %v3757_v14 }
0x12d2   :  { %2323 = vmatpush1.msra.mxu0 %v3770_v16 }
0x12d3   :  { %2620 = vmatprep.subr.mxu0 %v3664_v61 }
0x1383   :  { %v2048_v59 = vpop.f32.mrf.mxu0 }
0x1384   :  { %v2049_v60 = vadd.f32 %v2048_v59, %v1975_v58 }
0x1385   :  { %v2050_v18 = vpop.f32.mrf.mxu0 }
0x1386   :  { %3185 = vtanh.f32 %v2049_v60  ;;  %v2051_v19 = vadd.f32 %v2050_v18, %v1976_v17  ;;  %v2920_v24 = vmul.f32 -1.442695, %v2049_v60 }
0x1388   :  { %3187 = vtanh.f32 %v2051_v19  ;;  %v2921_v25 = vmul.f32 -1.442695, %v2051_v19 }
0x1389   :  { %3189 = vpow2.f32 %v2920_v24 }
0x138a   :  { %3191 = vpow2.f32 %v2921_v25 }
0x1393   :  { %v3186_v20 = vpop.eup %3185 }
0x1394   :  { %2069 = vrot.lane.b32.xlu0 %v3186_v20, %s3341_s7 }
0x1395   :  { %v3188_v23 = vpop.eup %3187 }
0x1396   :  { %2086 = vrot.lane.b32.xlu1 %v3188_v23, %s3341_s7  ;;  %v3190_v26 = vpop.eup %3189 }
0x1397   :  { %v3192_v41 = vpop.eup %3191  ;;  %v2059_v27 = vadd.f32 1.0, %v3190_v26 }
0x1398   :  { %v2060_v28 = vadd.f32 1.0, %v3192_v41 }
0x1399   :  { %3193 = vrcp.f32 %v2059_v27 }
0x139a   :  { %3195 = vrcp.f32 %v2060_v28 }
0x13a6   :  { %v3194_v22 = vpop.eup %3193 }
0x13a7   :  { %v3196_v57 = vpop.eup %3195  ;;  %v2067_v33 = vmul.f32 %v3194_v22, %v3852_v63 }
0x13a8   :  { %v2084_v35 = vmul.f32 %v3196_v57, %v3856_v39 }
0x1406   :  { %v2070_v29 = vpop.permute.xlu0 %2069 }
0x1407   :  { %v2072_v30 = vmul.f32 %v3194_v22, %v2070_v29 }
0x1408   :  { %v2087_v31 = vpop.permute.xlu1 %2086 }
0x1409   :  { %2074 = vrot.lane.b32.xlu0 %v2072_v30, %s3342_s8  ;;  %v2089_v32 = vmul.f32 %v3196_v57, %v2087_v31 }
0x140b   :  { %2091 = vrot.lane.b32.xlu1 %v2089_v32, %s3342_s8 }
0x147b   :  { %v2075_v45 = vpop.permute.xlu0 %2074 }
0x147c   :  { %v3892_v34 = vadd.f32 %v2075_v45, %v2067_v33 }
0x147d   :  { %v2092_v36 = vpop.permute.xlu1 %2091 }
0x147e   :  { %3197 = vtanh.f32 %v3892_v34  ;;  %v3896_v48 = vadd.f32 %v2092_v36, %v2084_v35 }
0x1480   :  { %3199 = vtanh.f32 %v3896_v48 }
0x148b   :  { %v3198_v50 = vpop.eup %3197 }
0x148c   :  { %2080 = vrot.lane.b32.xlu0 %v3198_v50, %s3341_s7 }
0x148d   :  { %v3200_v37 = vpop.eup %3199 }
0x148e   :  { %2097 = vrot.lane.b32.xlu1 %v3200_v37, %s3341_s7 }
0x14fe   :  { %v2081_v38 = vpop.permute.xlu0 %2080 }
0x14ff   :  { %v2083_v63 = vmul.f32 %v3194_v22, %v2081_v38  ;;  %v2285_v38 = vrot.slane %v3653_v47, 2 }
0x1500   :  { %v2098_v42 = vpop.permute.xlu1 %2097 }
0x1501   :  { %2123 = vrot.lane.b32.xlu0 %v2083_v63, %s3342_s8  ;;  %v3902_v46 = vmul.f32 %v3196_v57, %v2098_v42 }
0x1503   :  { %2127 = vrot.lane.b32.xlu1 %v3902_v46, %s3341_s7 }
0x1573   :  { %v2124_v39 = vpop.permute.xlu0 %2123 }
0x1575   :  { %v2128_v51 = vpop.permute.xlu1 %2127 }
0x1576   :  { %v2130_v40 = vsel %vm75_vm7, %v2124_v39, %v2128_v51  ;;  %v2286_v39 = vrot.slane %v3927_v49, 2 }
0x1577   :  { %2923 = vmatmul.mubr.msk.f32.vlgmr.msra.gmra.mxu1 %vm1657_vm15, %v2130_v40 }
0x1578   :  { %2465 = vmatpush1.msra.mxu1 %v3669_v62  ;;  %2512 = vmatprep.mubr.f32.mxu1 %v3332_v11 }
0x1579   :  { %2466 = vmatprep.subr.mxu1 %v3674_v0 }
0x157a   :  { %2467 = vmatpush1.msra.mxu1 %v3680_v1 }
0x157b   :  { %2468 = vmatprep.subr.mxu1 %v3687_v2 }
0x157c   :  { %2469 = vmatpush1.msra.mxu1 %v3694_v3 }
0x157d   :  { %2470 = vmatprep.subr.mxu1 %v3701_v4 }
0x157e   :  { %2471 = vmatpush1.msra.mxu1 %v3708_v5 }
0x157f   :  { %2472 = vmatprep.subr.mxu1 %v3715_v6 }
0x1580   :  { %2473 = vmatpush1.msra.mxu1 %v3722_v7 }
0x1581   :  { %2474 = vmatprep.subr.mxu1 %v3729_v8 }
0x1582   :  { %2475 = vmatpush1.msra.mxu1 %v3736_v9 }
0x1583   :  { %2476 = vmatprep.subr.mxu1 %v3743_v12 }
0x1584   :  { %2477 = vmatpush1.msra.mxu1 %v3751_v13 }
0x1585   :  { %2478 = vmatprep.subr.mxu1 %v3757_v14 }
0x1586   :  { %2479 = vmatpush1.msra.mxu1 %v3770_v16 }
0x1587   :  { %2772 = vmatprep.subr.mxu1 %v3664_v61 }
0x1637   :  { %v2200_v52 = vpop.f32.mrf.mxu1 }
0x1638   :  { %v2201_v44 = vadd.f32 %v2200_v52, %v3653_v47 }
0x1639   :  { %v2202_v55 = vpop.f32.mrf.mxu1 }
0x163a   :  { %3201 = vtanh.f32 %v2201_v44  ;;  %v2203_v58 = vadd.f32 %v2202_v55, %v3927_v49  ;;  %v2924_v17 = vmul.f32 -1.442695, %v2201_v44 }
0x163c   :  { %3203 = vtanh.f32 %v2203_v58  ;;  %v2925_v61 = vmul.f32 -1.442695, %v2203_v58 }
0x163d   :  { %3205 = vpow2.f32 %v2924_v17 }
0x163e   :  { %3207 = vpow2.f32 %v2925_v61 }
0x1647   :  { %v3202_v59 = vpop.eup %3201 }
0x1648   :  { %2221 = vrot.lane.b32.xlu0 %v3202_v59, %s3341_s7 }
0x1649   :  { %v3204_v60 = vpop.eup %3203 }
0x164a   :  { %2238 = vrot.lane.b32.xlu1 %v3204_v60, %s3341_s7  ;;  %v3206_v18 = vpop.eup %3205 }
0x164b   :  { %v3208_v10 = vpop.eup %3207  ;;  %v2211_v19 = vadd.f32 1.0, %v3206_v18 }
0x164c   :  { %v2212_v20 = vadd.f32 1.0, %v3208_v10 }
0x164d   :  { %3209 = vrcp.f32 %v2211_v19 }
0x164e   :  { %3211 = vrcp.f32 %v2212_v20 }
0x165a   :  { %v3210_v23 = vpop.eup %3209 }
0x165b   :  { %v3212_v26 = vpop.eup %3211  ;;  %v2219_v28 = vmul.f32 %v3210_v23, %v3892_v34 }
0x165c   :  { %v2236_v30 = vmul.f32 %v3212_v26, %v3896_v48 }
0x16ba   :  { %v2222_v24 = vpop.permute.xlu0 %2221 }
0x16bb   :  { %v2224_v25 = vmul.f32 %v3210_v23, %v2222_v24 }
0x16bc   :  { %v2239_v41 = vpop.permute.xlu1 %2238 }
0x16bd   :  { %2226 = vrot.lane.b32.xlu0 %v2224_v25, %s3342_s8  ;;  %v2241_v27 = vmul.f32 %v3212_v26, %v2239_v41 }
0x16bf   :  { %2243 = vrot.lane.b32.xlu1 %v2241_v27, %s3342_s8 }
0x172f   :  { %v2227_v22 = vpop.permute.xlu0 %2226 }
0x1730   :  { %v3936_v29 = vadd.f32 %v2227_v22, %v2219_v28 }
0x1731   :  { %v2244_v57 = vpop.permute.xlu1 %2243 }
0x1732   :  { %3213 = vtanh.f32 %v3936_v29  ;;  %v3940_v31 = vadd.f32 %v2244_v57, %v2236_v30 }
0x1734   :  { %3215 = vtanh.f32 %v3940_v31 }
0x173f   :  { %v3214_v32 = vpop.eup %3213 }
0x1740   :  { %2232 = vrot.lane.b32.xlu0 %v3214_v32, %s3341_s7 }
0x1741   :  { %v3216_v33 = vpop.eup %3215 }
0x1742   :  { %2249 = vrot.lane.b32.xlu1 %v3216_v33, %s3341_s7 }
0x17b2   :  { %v2233_v45 = vpop.permute.xlu0 %2232 }
0x17b3   :  { %v2235_v34 = vmul.f32 %v3210_v23, %v2233_v45 }
0x17b4   :  { %v2250_v35 = vpop.permute.xlu1 %2249 }
0x17b5   :  { %2275 = vrot.lane.b32.xlu0 %v2235_v34, %s3342_s8  ;;  %v3946_v36 = vmul.f32 %v3212_v26, %v2250_v35 }
0x17b7   :  { %2279 = vrot.lane.b32.xlu1 %v3946_v36, %s3341_s7 }
0x1827   :  { %v2276_v48 = vpop.permute.xlu0 %2275 }
0x1829   :  { %v2280_v50 = vpop.permute.xlu1 %2279 }
0x182a   :  { %v2282_v37 = vsel %vm75_vm7, %v2276_v48, %v2280_v50 }
0x182b   :  { %2927 = vmatmul.mubr.msk.f32.vlgmr.msra.gmra.mxu0 %vm1657_vm15, %v2282_v37 }
0x182c   :  { %2621 = vmatpush1.msra.mxu0 %v3669_v62  ;;  %2668 = vmatprep.mubr.f32.mxu0 %v3332_v11 }
0x182d   :  { %2622 = vmatprep.subr.mxu0 %v3674_v0 }
0x182e   :  { %2623 = vmatpush1.msra.mxu0 %v3680_v1 }
0x182f   :  { %2624 = vmatprep.subr.mxu0 %v3687_v2 }
0x1830   :  { %2625 = vmatpush1.msra.mxu0 %v3694_v3 }
0x1831   :  { %2626 = vmatprep.subr.mxu0 %v3701_v4 }
0x1832   :  { %2627 = vmatpush1.msra.mxu0 %v3708_v5 }
0x1833   :  { %2628 = vmatprep.subr.mxu0 %v3715_v6 }
0x1834   :  { %2629 = vmatpush1.msra.mxu0 %v3722_v7 }
0x1835   :  { %2630 = vmatprep.subr.mxu0 %v3729_v8 }
0x1836   :  { %2631 = vmatpush1.msra.mxu0 %v3736_v9 }
0x1837   :  { %2632 = vmatprep.subr.mxu0 %v3743_v12 }
0x1838   :  { %2633 = vmatpush1.msra.mxu0 %v3751_v13 }
0x1839   :  { %2634 = vmatprep.subr.mxu0 %v3757_v14 }
0x183a   :  { %2635 = vmatpush1.msra.mxu0 %v3770_v16 }
0x18eb   :  { %v2358_v63 = vpop.f32.mrf.mxu0 }
0x18ec   :  { %v2359_v42 = vadd.f32 %v2358_v63, %v2285_v38 }
0x18ed   :  { %v2360_v51 = vpop.f32.mrf.mxu0 }
0x18ee   :  { %3217 = vtanh.f32 %v2359_v42  ;;  %v2361_v40 = vadd.f32 %v2360_v51, %v2286_v39  ;;  %v2928_v55 = vmul.f32 -1.442695, %v2359_v42 }
0x18f0   :  { %3219 = vtanh.f32 %v2361_v40  ;;  %v2929_v58 = vmul.f32 -1.442695, %v2361_v40 }
0x18f1   :  { %3221 = vpow2.f32 %v2928_v55 }
0x18f2   :  { %3223 = vpow2.f32 %v2929_v58 }
0x18fb   :  { %v3218_v52 = vpop.eup %3217 }
0x18fc   :  { %2379 = vrot.lane.b32.xlu0 %v3218_v52, %s3341_s7 }
0x18fd   :  { %v3220_v44 = vpop.eup %3219 }
0x18fe   :  { %2396 = vrot.lane.b32.xlu1 %v3220_v44, %s3341_s7  ;;  %v3222_v59 = vpop.eup %3221 }
0x18ff   :  { %v3224_v60 = vpop.eup %3223  ;;  %v2369_v17 = vadd.f32 1.0, %v3222_v59 }
0x1900   :  { %v2370_v61 = vadd.f32 1.0, %v3224_v60 }
0x1901   :  { %3225 = vrcp.f32 %v2369_v17 }
0x1902   :  { %3227 = vrcp.f32 %v2370_v61 }
0x190e   :  { %v3226_v18 = vpop.eup %3225 }
0x190f   :  { %v3228_v20 = vpop.eup %3227  ;;  %v2377_v25 = vmul.f32 %v3226_v18, %v3936_v29 }
0x1910   :  { %v2394_v27 = vmul.f32 %v3228_v20, %v3940_v31 }
0x196e   :  { %v2380_v10 = vpop.permute.xlu0 %2379 }
0x196f   :  { %v2382_v19 = vmul.f32 %v3226_v18, %v2380_v10 }
0x1970   :  { %v2397_v23 = vpop.permute.xlu1 %2396 }
0x1971   :  { %2384 = vrot.lane.b32.xlu0 %v2382_v19, %s3342_s8  ;;  %v2399_v24 = vmul.f32 %v3228_v20, %v2397_v23  ;;  %v2597_v19 = vrot.slane %v3653_v47, 6 }
0x1973   :  { %2401 = vrot.lane.b32.xlu1 %v2399_v24, %s3342_s8  ;;  %v2598_v24 = vrot.slane %v3927_v49, 6 }
0x19e3   :  { %v2385_v26 = vpop.permute.xlu0 %2384 }
0x19e4   :  { %v3975_v41 = vadd.f32 %v2385_v26, %v2377_v25 }
0x19e5   :  { %v2402_v28 = vpop.permute.xlu1 %2401 }
0x19e6   :  { %3229 = vtanh.f32 %v3975_v41  ;;  %v3979_v22 = vadd.f32 %v2402_v28, %v2394_v27 }
0x19e8   :  { %3231 = vtanh.f32 %v3979_v22 }
0x19f3   :  { %v3230_v30 = vpop.eup %3229 }
0x19f4   :  { %2390 = vrot.lane.b32.xlu0 %v3230_v30, %s3341_s7 }
0x19f5   :  { %v3232_v57 = vpop.eup %3231 }
0x19f6   :  { %2407 = vrot.lane.b32.xlu1 %v3232_v57, %s3341_s7 }
0x1a66   :  { %v2391_v32 = vpop.permute.xlu0 %2390 }
0x1a67   :  { %v2393_v29 = vmul.f32 %v3226_v18, %v2391_v32 }
0x1a68   :  { %v2408_v33 = vpop.permute.xlu1 %2407 }
0x1a69   :  { %2433 = vrot.lane.b32.xlu0 %v2393_v29, %s3342_s8  ;;  %v3985_v45 = vmul.f32 %v3228_v20, %v2408_v33 }
0x1a6b   :  { %2437 = vrot.lane.b32.xlu1 %v3985_v45, %s3341_s7 }
0x1adb   :  { %v2434_v31 = vpop.permute.xlu0 %2433 }
0x1add   :  { %v2438_v34 = vpop.permute.xlu1 %2437 }
0x1ade   :  { %v2440_v35 = vsel %vm75_vm7, %v2434_v31, %v2438_v34 }
0x1adf   :  { %2931 = vmatmul.mubr.msk.f32.vlgmr.msra.gmra.mxu1 %vm1657_vm15, %v2440_v35 }
0x1ae0   :  { %2773 = vmatpush1.msra.mxu1 %v3669_v62  ;;  %2820 = vmatprep.mubr.f32.mxu1 %v3332_v11  ;;  %v2441_v11 = vrot.slane %v3653_v47, 4 }
0x1ae1   :  { %2774 = vmatprep.subr.mxu1 %v3674_v0 }
0x1ae2   :  { %2775 = vmatpush1.msra.mxu1 %v3680_v1  ;;  %v2442_v1 = vrot.slane %v3927_v49, 4 }
0x1ae3   :  { %2776 = vmatprep.subr.mxu1 %v3687_v2 }
0x1ae4   :  { %2777 = vmatpush1.msra.mxu1 %v3694_v3 }
0x1ae5   :  { %2778 = vmatprep.subr.mxu1 %v3701_v4 }
0x1ae6   :  { %2779 = vmatpush1.msra.mxu1 %v3708_v5 }
0x1ae7   :  { %2780 = vmatprep.subr.mxu1 %v3715_v6 }
0x1ae8   :  { %2781 = vmatpush1.msra.mxu1 %v3722_v7 }
0x1ae9   :  { %2782 = vmatprep.subr.mxu1 %v3729_v8 }
0x1aea   :  { %2783 = vmatpush1.msra.mxu1 %v3736_v9 }
0x1aeb   :  { %2784 = vmatprep.subr.mxu1 %v3743_v12 }
0x1aec   :  { %2785 = vmatpush1.msra.mxu1 %v3751_v13 }
0x1aed   :  { %2786 = vmatprep.subr.mxu1 %v3757_v14 }
0x1aee   :  { %2787 = vmatpush1.msra.mxu1 %v3770_v16 }
0x1b9f   :  { %v2514_v62 = vpop.f32.mrf.mxu1 }
0x1ba0   :  { %v2515_v0 = vadd.f32 %v2514_v62, %v2441_v11 }
0x1ba1   :  { %v2516_v2 = vpop.f32.mrf.mxu1 }
0x1ba2   :  { %3233 = vtanh.f32 %v2515_v0  ;;  %v2517_v3 = vadd.f32 %v2516_v2, %v2442_v1  ;;  %v2932_v6 = vmul.f32 -1.442695, %v2515_v0 }
0x1ba4   :  { %3235 = vtanh.f32 %v2517_v3  ;;  %v2933_v7 = vmul.f32 -1.442695, %v2517_v3 }
0x1ba5   :  { %3237 = vpow2.f32 %v2932_v6 }
0x1ba6   :  { %3239 = vpow2.f32 %v2933_v7 }
0x1baf   :  { %v3234_v4 = vpop.eup %3233 }
0x1bb0   :  { %2535 = vrot.lane.b32.xlu0 %v3234_v4, %s3341_s7 }
0x1bb1   :  { %v3236_v5 = vpop.eup %3235 }
0x1bb2   :  { %2552 = vrot.lane.b32.xlu1 %v3236_v5, %s3341_s7  ;;  %v3238_v8 = vpop.eup %3237 }
0x1bb3   :  { %v3240_v9 = vpop.eup %3239  ;;  %v2525_v12 = vadd.f32 1.0, %v3238_v8 }
0x1bb4   :  { %v2526_v13 = vadd.f32 1.0, %v3240_v9 }
0x1bb5   :  { %3241 = vrcp.f32 %v2525_v12 }
0x1bb6   :  { %3243 = vrcp.f32 %v2526_v13 }
0x1bc2   :  { %v3242_v14 = vpop.eup %3241 }
0x1bc3   :  { %v3244_v50 = vpop.eup %3243  ;;  %v2533_v63 = vmul.f32 %v3242_v14, %v3975_v41 }
0x1bc4   :  { %v2550_v51 = vmul.f32 %v3244_v50, %v3979_v22 }
0x1c22   :  { %v2536_v16 = vpop.permute.xlu0 %2535 }
0x1c23   :  { %v2538_v48 = vmul.f32 %v3242_v14, %v2536_v16 }
0x1c24   :  { %v2553_v37 = vpop.permute.xlu1 %2552 }
0x1c25   :  { %2540 = vrot.lane.b32.xlu0 %v2538_v48, %s3342_s8  ;;  %v2555_v38 = vmul.f32 %v3244_v50, %v2553_v37 }
0x1c27   :  { %2557 = vrot.lane.b32.xlu1 %v2555_v38, %s3342_s8  ;;  %v3305_v38 = vld [vmem:[%s4084_s1 + $0xc8] sm:$0xf]  ;;  %s3343_s1 = smov 1  }
0x1c97   :  { %v2541_v42 = vpop.permute.xlu0 %2540 }
0x1c98   :  { %v2543_v39 = vadd.f32 %v2541_v42, %v2533_v63  ;;  %v1783_v63 = vrot.slane %v3305_v38, %v163_v54 }
0x1c99   :  { %v2558_v40 = vpop.permute.xlu1 %2557 }
0x1c9a   :  { %3245 = vtanh.f32 %v2543_v39  ;;  %v2560_v52 = vadd.f32 %v2558_v40, %v2550_v51 }
0x1c9c   :  { %3247 = vtanh.f32 %v2560_v52 }
0x1ca7   :  { %v3246_v44 = vpop.eup %3245 }
0x1ca8   :  { %2546 = vrot.lane.b32.xlu0 %v3246_v44, %s3341_s7 }
0x1ca9   :  { %v3248_v55 = vpop.eup %3247 }
0x1caa   :  { %2563 = vrot.lane.b32.xlu1 %v3248_v55, %s3341_s7 }
0x1d1a   :  { %v2547_v58 = vpop.permute.xlu0 %2546 }
0x1d1b   :  { %v2549_v59 = vmul.f32 %v3242_v14, %v2547_v58 }
0x1d1c   :  { %v2564_v60 = vpop.permute.xlu1 %2563 }
0x1d1d   :  { %2589 = vrot.lane.b32.xlu0 %v2549_v59, %s3342_s8  ;;  %v4018_v17 = vmul.f32 %v3244_v50, %v2564_v60 }
0x1d1f   :  { %2593 = vrot.lane.b32.xlu1 %v4018_v17, %s3341_s7 }
0x1d8f   :  { %v2590_v61 = vpop.permute.xlu0 %2589 }
0x1d91   :  { %v2594_v18 = vpop.permute.xlu1 %2593 }
0x1d92   :  { %v2596_v10 = vsel %vm75_vm7, %v2590_v61, %v2594_v18 }
0x1d93   :  { %2935 = vmatmul.mubr.msk.f32.vlgmr.msra.gmra.mxu0 %vm1657_vm15, %v2596_v10 }
0x1e53   :  { %v2670_v20 = vpop.f32.mrf.mxu0 }
0x1e54   :  { %v2671_v23 = vadd.f32 %v2670_v20, %v2597_v19 }
0x1e55   :  { %v2672_v25 = vpop.f32.mrf.mxu0 }
0x1e56   :  { %3249 = vtanh.f32 %v2671_v23  ;;  %v2673_v26 = vadd.f32 %v2672_v25, %v2598_v24  ;;  %v2936_v28 = vmul.f32 -1.442695, %v2671_v23 }
0x1e58   :  { %3251 = vtanh.f32 %v2673_v26  ;;  %v2937_v22 = vmul.f32 -1.442695, %v2673_v26 }
0x1e59   :  { %3253 = vpow2.f32 %v2936_v28 }
0x1e5a   :  { %3255 = vpow2.f32 %v2937_v22  ;;  %v4064_v22 = vrot.slane %v3305_v38, %v1023_v15 }
0x1e63   :  { %v3250_v41 = vpop.eup %3249 }
0x1e64   :  { %2691 = vrot.lane.b32.xlu0 %v3250_v41, %s3341_s7 }
0x1e65   :  { %v3252_v27 = vpop.eup %3251 }
0x1e66   :  { %2708 = vrot.lane.b32.xlu1 %v3252_v27, %s3341_s7  ;;  %v3254_v30 = vpop.eup %3253 }
0x1e67   :  { %v3256_v47 = vpop.eup %3255  ;;  %v2681_v57 = vadd.f32 1.0, %v3254_v30 }
0x1e68   :  { %v2682_v32 = vadd.f32 1.0, %v3256_v47 }
0x1e69   :  { %3257 = vrcp.f32 %v2681_v57 }
0x1e6a   :  { %3259 = vrcp.f32 %v2682_v32 }
0x1e76   :  { %v3258_v49 = vpop.eup %3257 }
0x1e77   :  { %v3260_v31 = vpop.eup %3259  ;;  %v2689_v11 = vmul.f32 %v3258_v49, %v2543_v39 }
0x1e78   :  { %v2706_v1 = vmul.f32 %v3260_v31, %v2560_v52 }
0x1ed6   :  { %v2692_v29 = vpop.permute.xlu0 %2691 }
0x1ed7   :  { %v2694_v33 = vmul.f32 %v3258_v49, %v2692_v29 }
0x1ed8   :  { %v2709_v34 = vpop.permute.xlu1 %2708 }
0x1ed9   :  { %2696 = vrot.lane.b32.xlu0 %v2694_v33, %s3342_s8  ;;  %v2711_v35 = vmul.f32 %v3260_v31, %v2709_v34 }
0x1edb   :  { %2713 = vrot.lane.b32.xlu1 %v2711_v35, %s3342_s8 }
0x1f4b   :  { %v2697_v62 = vpop.permute.xlu0 %2696 }
0x1f4c   :  { %v2699_v0 = vadd.f32 %v2697_v62, %v2689_v11 }
0x1f4d   :  { %v2714_v2 = vpop.permute.xlu1 %2713 }
0x1f4e   :  { %3261 = vtanh.f32 %v2699_v0  ;;  %v2716_v3 = vadd.f32 %v2714_v2, %v2706_v1 }
0x1f50   :  { %3263 = vtanh.f32 %v2716_v3 }
0x1f5b   :  { %v3262_v4 = vpop.eup %3261 }
0x1f5c   :  { %2702 = vrot.lane.b32.xlu0 %v3262_v4, %s3341_s7 }
0x1f5d   :  { %v3264_v5 = vpop.eup %3263 }
0x1f5e   :  { %2719 = vrot.lane.b32.xlu1 %v3264_v5, %s3341_s7 }
0x1fce   :  { %v2703_v6 = vpop.permute.xlu0 %2702 }
0x1fcf   :  { %v2705_v7 = vmul.f32 %v3258_v49, %v2703_v6 }
0x1fd0   :  { %v2720_v8 = vpop.permute.xlu1 %2719 }
0x1fd1   :  { %2745 = vrot.lane.b32.xlu0 %v2705_v7, %s3342_s8  ;;  %v2722_v9 = vmul.f32 %v3260_v31, %v2720_v8 }
0x1fd3   :  { %2749 = vrot.lane.b32.xlu1 %v2722_v9, %s3341_s7 }
0x2043   :  { %v2746_v12 = vpop.permute.xlu0 %2745 }
0x2045   :  { %v2750_v13 = vpop.permute.xlu1 %2749 }
0x2046   :  { %v2752_v14 = vsel %vm75_vm7, %v2746_v12, %v2750_v13  ;;  %vm2742_vm7 = vcmask 50224  }
0x2047   :  { %2939 = vmatmul.mubr.msk.f32.vlgmr.msra.gmra.mxu1 %vm1657_vm15, %v2752_v14 }
0x2107   :  { %v2822_v16 = vpop.f32.mrf.mxu1 }
0x2109   :  { %v2823_v48 = vpop.f32.mrf.mxu1 }
0x210a   :  { %v2824_v50 = vadd.f32 %v2823_v48, %v3798_v21 }
0x210c   :  { %3265 = vtanh.f32 %v2824_v50  ;;  %v2940_v42 = vmul.f32 -1.442695, %v2824_v50 }
0x210e   :  { %3267 = vpow2.f32 %v2940_v42 }
0x2119   :  { %v3266_v37 = vpop.eup %3265 }
0x211a   :  { %2835 = vrot.lane.b32.xlu0 %v3266_v37, %s3341_s7 }
0x211b   :  { %v3268_v39 = vpop.eup %3267 }
0x211c   :  { %v2829_v51 = vadd.f32 1.0, %v3268_v39 }
0x211e   :  { %1785 = vrot.lane.b32.xlu0 %v1783_v63, %s3336_s15  ;;  %3269 = vrcp.f32 %v2829_v51  ;;  %s3344_s15 = smov 2  }
0x212b   :  { %v3270_v40 = vpop.eup %3269 }
0x218c   :  { %v2836_v21 = vpop.permute.xlu0 %2835 }
0x218d   :  { %v2838_v52 = vmul.f32 %v3270_v40, %v2836_v21 }
0x218f   :  { %2840 = vrot.lane.b32.xlu1 %v2838_v52, %s3342_s8 }
0x2190   :  { %v1786_v44 = vpop.permute.xlu0 %1785 }
0x2191   :  { %v1788_v55 = vmul.f32 %v1786_v44, %v3820_v56  ;;  %v1945_v58 = vmul.f32 %v3862_v53, %v1786_v44  ;;  %v2101_v54 = vmul.f32 %v3902_v46, %v1786_v44  ;;  %v2253_v59 = vmul.f32 %v3946_v36, %v1786_v44 }
0x2192   :  { %v2411_v60 = vmul.f32 %v3985_v45, %v1786_v44  ;;  %v2567_v61 = vmul.f32 %v4018_v17, %v1786_v44  ;;  %v2723_v56 = vmul.f32 %v2722_v9, %v1786_v44  ;;  %v2833_v53 = vmul.f32 %v3270_v40, %v2716_v3 }
0x2193   :  { %1790 = vrot.lane.b32.xlu0 %v1788_v55, %s3342_s8  ;;  %1947 = vrot.lane.b32.xlu1 %v1945_v58, %s3342_s8 }
0x2197   :  { %2103 = vrot.lane.b32.xlu0 %v2101_v54, %s3342_s8  ;;  %2255 = vrot.lane.b32.xlu1 %v2253_v59, %s3342_s8 }
0x219b   :  { %2413 = vrot.lane.b32.xlu0 %v2411_v60, %s3342_s8  ;;  %2569 = vrot.lane.b32.xlu1 %v2567_v61, %s3342_s8 }
0x219f   :  { %2725 = vrot.lane.b32.xlu0 %v2723_v56, %s3342_s8 }
0x2201   :  { %v2841_v18 = vpop.permute.xlu1 %2840 }
0x2202   :  { %v2843_v46 = vadd.f32 %v2841_v18, %v2833_v53 }
0x2204   :  { %3271 = vtanh.f32 %v2843_v46 }
0x2205   :  { %v1791_v36 = vpop.permute.xlu0 %1790  ;;  %v1948_v45 = vpop.permute.xlu1 %1947 }
0x2206   :  { %v1794_v10 = vsel %vm1793_vm0, %v1791_v36, 0.0  ;;  %v1950_v17 = vsel %vm1793_vm0, %v1948_v45, 0.0 }
0x2207   :  { %1795 = vadd.xlane.f32.xlu0 %v1794_v10 }
0x2209   :  { %v2256_v20 = vpop.permute.xlu1 %2255  ;;  %v2104_v23 = vpop.permute.xlu0 %2103 }
0x220a   :  { %v2106_v29 = vsel %vm1793_vm0, %v2104_v23, 0.0  ;;  %v2258_v62 = vsel %vm1793_vm0, %v2256_v20, 0.0 }
0x220d   :  { %v2570_v24 = vpop.permute.xlu1 %2569  ;;  %v2414_v41 = vpop.permute.xlu0 %2413 }
0x220e   :  { %v2572_v0 = vsel %vm1793_vm0, %v2570_v24, 0.0  ;;  %v2416_v13 = vsel %vm1793_vm0, %v2414_v41, 0.0 }
0x2211   :  { %v3272_v19 = vpop.eup %3271  ;;  %v2726_v28 = vpop.permute.xlu0 %2725 }
0x2212   :  { %2846 = vrot.lane.b32.xlu1 %v3272_v19, %s3341_s7  ;;  %v2728_v1 = vsel %vm1793_vm0, %v2726_v28, 0.0  ;;  %s3345_s7 = smov 3  }
0x2236   :  { %1951 = vadd.xlane.f32.xlu1 %v1950_v17 }
0x2284   :  { %v2847_v25 = vpop.permute.xlu1 %2846 }
0x2285   :  { %v2849_v26 = vmul.f32 %v3270_v40, %v2847_v25 }
0x2287   :  { %v2850_v27 = vmul.f32 %v2849_v26, %v1786_v44 }
0x2289   :  { %2852 = vrot.lane.b32.xlu1 %v2850_v27, %s3342_s8  ;;  %s3346_s8 = smov 5  }
0x2290   :  { %v1796_v30 = vpop.xlane.xlu0 %1795 }
0x2291   :  { %v1801_v47 = vadd.f32 %v4064_v22, %v1796_v30 }
0x2293   :  { %v2914_v57 = vmul.f32 -1.442695, %v1801_v47 }
0x2295   :  { %3273 = vpow2.f32 %v2914_v57 }
0x22a2   :  { %v3274_v32 = vpop.eup %3273 }
0x22a3   :  { %v1805_v49 = vadd.f32 1.0, %v3274_v32 }
0x22a5   :  { %3275 = vrcp.f32 %v1805_v49 }
0x22ad   :  { %2107 = vadd.xlane.f32.xlu1 %v2106_v29 }
0x22b2   :  { %v3276_v33 = vpop.eup %3275 }
0x22b3   :  { %1809 = vst.msk [vmem:[#allocation2] sm:$0x3] %vm1808_vm1, %v3276_v33 }
0x22bf   :  { %v1952_v31 = vpop.xlane.xlu1 %1951 }
0x22c0   :  { %v1953_v34 = vadd.f32 %v1952_v31, %v4064_v22 }
0x22c2   :  { %v2918_v43 = vmul.f32 -1.442695, %v1953_v34 }
0x22c4   :  { %3277 = vpow2.f32 %v2918_v43 }
0x22d1   :  { %v3278_v15 = vpop.eup %3277 }
0x22d2   :  { %v1957_v35 = vadd.f32 1.0, %v3278_v15 }
0x22d4   :  { %3279 = vrcp.f32 %v1957_v35 }
0x22e1   :  { %v3280_v11 = vpop.eup %3279 }
0x22e2   :  { %1961 = vrot.lane.b32.xlu0 %v3280_v11, %s3343_s1 }
0x22fb   :  { %v2853_v2 = vpop.permute.xlu1 %2852 }
0x22fc   :  { %v2855_v3 = vsel %vm1793_vm0, %v2853_v2, 0.0 }
0x2301   :  { %2259 = vadd.xlane.f32.xlu0 %v2258_v62 }
0x2305   :  { %2573 = vadd.xlane.f32.xlu0 %v2572_v0 }
0x2309   :  { %2729 = vadd.xlane.f32.xlu0 %v2728_v1 }
0x230d   :  { %2856 = vadd.xlane.f32.xlu0 %v2855_v3 }
0x2336   :  { %v2108_v4 = vpop.xlane.xlu1 %2107 }
0x2337   :  { %v2109_v5 = vadd.f32 %v2108_v4, %v4064_v22 }
0x2339   :  { %v2922_v6 = vmul.f32 -1.442695, %v2109_v5 }
0x233b   :  { %3281 = vpow2.f32 %v2922_v6 }
0x2348   :  { %v3282_v7 = vpop.eup %3281 }
0x2349   :  { %v2113_v8 = vadd.f32 1.0, %v3282_v7 }
0x234b   :  { %3283 = vrcp.f32 %v2113_v8 }
0x2354   :  { %v1962_v9 = vpop.permute.xlu0 %1961 }
0x2355   :  { %1965 = vst.msk [vmem:[#allocation2] sm:$0x3] %vm1964_vm2, %v1962_v9 }
0x2358   :  { %v3284_v12 = vpop.eup %3283 }
0x2359   :  { %2117 = vrot.lane.b32.xlu1 %v3284_v12, %s3344_s15 }
0x237d   :  { %2417 = vadd.xlane.f32.xlu1 %v2416_v13 }
0x238a   :  { %v2260_v14 = vpop.xlane.xlu0 %2259 }
0x238b   :  { %v2261_v16 = vadd.f32 %v2260_v14, %v4064_v22 }
0x238d   :  { %v2926_v48 = vmul.f32 -1.442695, %v2261_v16 }
0x238e   :  { %v2574_v50 = vpop.xlane.xlu0 %2573 }
0x238f   :  { %3285 = vpow2.f32 %v2926_v48  ;;  %v2575_v37 = vadd.f32 %v2574_v50, %v4064_v22 }
0x2391   :  { %v2934_v38 = vmul.f32 -1.442695, %v2575_v37 }
0x2392   :  { %v2730_v63 = vpop.xlane.xlu0 %2729 }
0x2393   :  { %3287 = vpow2.f32 %v2934_v38  ;;  %v2731_v42 = vadd.f32 %v2730_v63, %v4064_v22 }
0x2395   :  { %v2938_v39 = vmul.f32 -1.442695, %v2731_v42 }
0x2396   :  { %v2857_v61 = vpop.xlane.xlu0 %2856 }
0x2397   :  { %3289 = vpow2.f32 %v2938_v39  ;;  %v2858_v56 = vadd.f32 %v2857_v61, %v4064_v22 }
0x2399   :  { %v2941_v53 = vmul.f32 -1.442695, %v2858_v56 }
0x239c   :  { %v3286_v51 = vpop.eup %3285 }
0x239d   :  { %v2265_v40 = vadd.f32 1.0, %v3286_v51 }
0x239f   :  { %3291 = vrcp.f32 %v2265_v40 }
0x23a0   :  { %v3288_v21 = vpop.eup %3287 }
0x23a1   :  { %v2579_v52 = vadd.f32 1.0, %v3288_v21 }
0x23a3   :  { %3293 = vrcp.f32 %v2579_v52 }
0x23a4   :  { %v3290_v44 = vpop.eup %3289 }
0x23a5   :  { %v2735_v55 = vadd.f32 1.0, %v3290_v44 }
0x23a7   :  { %3295 = vrcp.f32 %v2735_v55 }
0x23a8   :  { %3297 = vpow2.f32 %v2941_v53 }
0x23ac   :  { %v3292_v58 = vpop.eup %3291 }
0x23ad   :  { %2269 = vrot.lane.b32.xlu1 %v3292_v58, %s3345_s7 }
0x23b0   :  { %v3294_v54 = vpop.eup %3293 }
0x23b1   :  { %2583 = vrot.lane.b32.xlu1 %v3294_v54, %s3346_s8 }
0x23b4   :  { %v3296_v59 = vpop.eup %3295 }
0x23b5   :  { %2739 = vrot.lane.b32.xlu1 %v3296_v59, %s3347_s0  ;;  %v3298_v10 = vpop.eup %3297 }
0x23b6   :  { %v2862_v17 = vadd.f32 1.0, %v3298_v10 }
0x23cb   :  { %v2118_v60 = vpop.permute.xlu1 %2117 }
0x23cc   :  { %2121 = vst.msk [vmem:[#allocation2] sm:$0x3] %vm2120_vm3, %v2118_v60 }
0x2406   :  { %v2418_v18 = vpop.xlane.xlu1 %2417 }
0x2407   :  { %v2419_v46 = vadd.f32 %v2418_v18, %v4064_v22 }
0x2409   :  { %v2930_v36 = vmul.f32 -1.442695, %v2419_v46 }
0x240b   :  { %3299 = vpow2.f32 %v2930_v36 }
0x2418   :  { %v3300_v19 = vpop.eup %3299 }
0x2419   :  { %v2423_v45 = vadd.f32 1.0, %v3300_v19 }
0x241b   :  { %3301 = vrcp.f32 %v2423_v45 }
0x241c   :  { %3303 = vrcp.f32 %v2862_v17 }
0x241f   :  { %v2270_v20 = vpop.permute.xlu1 %2269 }
0x2420   :  { %2273 = vst.msk [vmem:[#allocation2] sm:$0x3] %vm2272_vm4, %v2270_v20 }
0x2423   :  { %v2584_v25 = vpop.permute.xlu1 %2583 }
0x2427   :  { %v2740_v41 = vpop.permute.xlu1 %2739 }
0x2428   :  { %v3302_v23 = vpop.eup %3301 }
0x2429   :  { %2427 = vrot.lane.b32.xlu0 %v3302_v23, %s3348_s18  ;;  %v3304_v24 = vpop.eup %3303 }
0x242d   :  { %2866 = vrot.lane.b32.xlu0 %v3304_v24, %s3349_s19 }
0x249b   :  { %v2428_v26 = vpop.permute.xlu0 %2427 }
0x249c   :  { %2431 = vst.msk [vmem:[#allocation2] sm:$0x3] %vm2430_vm5, %v2428_v26 }
0x249d   :  { %2587 = vst.msk [vmem:[#allocation2] sm:$0x3] %vm2586_vm6, %v2584_v25 }
0x249e   :  { %2743 = vst.msk [vmem:[#allocation2] sm:$0x3] %vm2742_vm7, %v2740_v41 }
0x249f   :  { %v2867_v27 = vpop.permute.xlu0 %2866 }
0x24a0   :  { %2870 = vst.msk [vmem:[#allocation2] sm:$0x3] %vm2869_vm8, %v2867_v27 }
0x24a1   :  { %3317 = shalt.err (!%p3314_p4)
}
0x24a2   :  { %2880 = dma.vmem_to_hbm [thread:$0]  %s2878_s21, 32, %s4086_s3, [#allocation3]  }
0x24a3   :  { %3326 = dma.done.wait [#allocation3], 32  }
0x24a4   :  { %3327 = vsyncadd [#allocation3], 4294967264 }
0x24a5   :  { %2884 = vsyncpa [#allocation3], 1 }

</bundles_post_ra>
